<compile_context>
chip_gen: v6e
topology: v6e:2x2x1
jax: 0.10.0
libtpu: 0.0.40
codegen_flags: <defaults>
</compile_context>

<pallas_src>
import jax
import jax.numpy as jnp
from jax.experimental import pallas as pl
from jax.experimental.pallas import tpu as pltpu

_REEIG_EPS = 1e-4  # nn_spd.ReEig eigenvalue threshold


# ----------------------------------------------------------------------------
# Single-grid-step pallas_call helper (full-array blocks, one DMA in / out).
# ----------------------------------------------------------------------------
def _full_block(shape):
    zeros = (0,) * len(shape)
    return pl.BlockSpec(tuple(shape), lambda i: zeros)


def _single_step_call(kernel, in_arrays, out_shape):
    return pl.pallas_call(
        kernel,
        out_shape=out_shape,
        grid_spec=pltpu.PrefetchScalarGridSpec(
            num_scalar_prefetch=0,
            grid=(1,),
            in_specs=[_full_block(a.shape) for a in in_arrays],
            out_specs=_full_block(out_shape.shape),
        ),
        compiler_params=pltpu.CompilerParams(
            dimension_semantics=("arbitrary",),
        ),
    )(*in_arrays)


# ----------------------------------------------------------------------------
# Pallas kernels (all loops are over tiny static channel/batch counts -> unrolled).
# ----------------------------------------------------------------------------
def _bimap_kernel(wt_ref, w_ref, x_ref, y_ref):
    # wt_ref, w_ref: (Co, Ci, n, n) with wt[o,i] = w[o,i]^T ; x_ref: (B, Ci, n, n)
    # y[b,o] = sum_i  w[o,i]^T x[b,i] w[o,i]
    B, Ci, n, _ = x_ref.shape
    Co = w_ref.shape[0]
    for b in range(B):
        for o in range(Co):
            acc = jnp.zeros((n, n), jnp.float32)
            for i in range(Ci):
                xw = jnp.dot(x_ref[b, i], w_ref[o, i],
                             preferred_element_type=jnp.float32)
                acc = acc + jnp.dot(wt_ref[o, i], xw,
                                    preferred_element_type=jnp.float32)
            y_ref[b, o] = acc.astype(y_ref.dtype)


def _congr_kernel(p_ref, pt_ref, y_ref, z_ref):
    # BatchNormSPD centering + re-biasing congruence:  z[b,c] = P y[b,c] P^T
    B, C, n, _ = y_ref.shape
    P = p_ref[...]
    Pt = pt_ref[...]
    for b in range(B):
        for c in range(C):
            t = jnp.dot(P, y_ref[b, c], preferred_element_type=jnp.float32)
            z_ref[b, c] = jnp.dot(
                t, Pt, preferred_element_type=jnp.float32).astype(z_ref.dtype)


def _reeig_recon_kernel(u_ref, ut_ref, s_ref, r_ref):
    # ReEig reconstruction: r[b,c] = U diag(max(S, eps)) U^T  (s_ref already rectified,
    # shape (B, C, 1, n) so the scale broadcasts over sublanes without 1-D vregs).
    B, C, n, _ = u_ref.shape
    for b in range(B):
        for c in range(C):
            us = u_ref[b, c] * s_ref[b, c]          # scale columns: (n,n) * (1,n)
            r_ref[b, c] = jnp.dot(
                us, ut_ref[b, c], preferred_element_type=jnp.float32).astype(r_ref.dtype)


# ----------------------------------------------------------------------------
# Wrappers around the kernels.
# ----------------------------------------------------------------------------
def bimap_pallas(w, x):
    B, Ci, n, _ = x.shape
    Co = w.shape[0]
    wt = jnp.swapaxes(w, -1, -2)   # pre-transpose in the wrapper: no in-kernel transposes
    return _single_step_call(
        _bimap_kernel, [wt, w, x],
        jax.ShapeDtypeStruct((B, Co, n, n), x.dtype))


def congruence_pallas(p, y):
    return _single_step_call(
        _congr_kernel, [p, p.T, y],
        jax.ShapeDtypeStruct(y.shape, y.dtype))


def reeig_recon_pallas(u, s_rect):
    B, C, n, _ = u.shape
    ut = jnp.swapaxes(u, -1, -2)
    return _single_step_call(
        _reeig_recon_kernel, [u, ut, s_rect.reshape(B, C, 1, n)],
        jax.ShapeDtypeStruct((B, C, n, n), u.dtype))


# ----------------------------------------------------------------------------
# Plain-JAX glue: eigendecomposition-based SPD functions (no Pallas eigensolver).
# ----------------------------------------------------------------------------
def _sym_mat_fn(m, fn):
    """U diag(fn(s)) U^T for symmetric (optionally batched) m."""
    s, u = jnp.linalg.eigh(m)
    return jnp.einsum('...ij,...j,...kj->...ik', u, fn(s), u)


def _bary_geom(mats, iters=1):
    """Karcher (geometric) barycenter of SPD matrices (N, n, n): one Karcher-flow step
    from the arithmetic mean, mirroring nn_spd.functional.BaryGeom (k=1)."""
    # TODO(synk): iterative eigendecompositions — no Pallas TPU eigensolver, JAX glue only.
    G = jnp.mean(mats, axis=0)
    for _ in range(iters):
        g_sq = _sym_mat_fn(G, jnp.sqrt)
        g_isq = _sym_mat_fn(G, lambda s: 1.0 / jnp.sqrt(s))
        centered = jnp.einsum('ij,njk,kl->nil', g_isq, mats, g_isq)
        mean_log = jnp.mean(_sym_mat_fn(centered, jnp.log), axis=0)
        G = g_sq @ _sym_mat_fn(mean_log, jnp.exp) @ g_sq
    return G


# ----------------------------------------------------------------------------
# Full BiMap_1_normal forward.
# ----------------------------------------------------------------------------
def bimap_1_normal_forward(params, x):
    """x: (B, C_in, dim_in, dim_in) batch of SPD matrices."""
    w = params['bimap_w']        # (C, C, n, n) Stiefel weights of BiMap
    g_bias = params['bn_bias']   # (n, n) SPD bias of BatchNormSPD (identity at init)
    B, C, n, _ = x.shape

    # --- BiMap (Pallas, MXU) ---
    y = bimap_pallas(w, x)

    # --- BatchNormSPD (training-mode batch statistics; running-mean update is a
    #     training-state side effect that does not change the forward output) ---
    # TODO(synk): Karcher mean + matrix sqrt / inv-sqrt need eigh -> plain-JAX glue.
    g_mean = _bary_geom(y.reshape(B * C, n, n), iters=1)
    m_isq = _sym_mat_fn(g_mean, lambda s: 1.0 / jnp.sqrt(s))   # Gm^{-1/2}
    g_sq = _sym_mat_fn(g_bias, jnp.sqrt)                       # G^{1/2} (= I at init)
    p = g_sq @ m_isq
    z = congruence_pallas(p, y)                                # Pallas congruence

    # --- ReEig ---
    # TODO(synk): the eigendecomposition itself has no Pallas equivalent; only the
    # U diag(max(S, eps)) U^T reconstruction runs in the Pallas kernel.
    s, u = jnp.linalg.eigh(z)
    s_rect = jnp.maximum(s, _REEIG_EPS)
    return reeig_recon_pallas(u, s_rect)


def init_params(key, C, n):
    """Deterministic init matching the torch module: BiMap weights are semi-orthogonal
    (orthonormal eigenbasis of v v^T with v ~ U(0,1)); BatchNormSPD bias is identity."""
    v = jax.random.uniform(key, (C, C, n, n), jnp.float32, minval=0.0, maxval=1.0)
    _, u = jnp.linalg.eigh(jnp.einsum('...ij,...kj->...ik', v, v))
    return {'bimap_w': u, 'bn_bias': jnp.eye(n, dtype=jnp.float32)}


if __name__ == '__main__':
    key = jax.random.PRNGKey(0)
    k_w, k_x = jax.random.split(key)

    B, C_in, dim_in = 2, 4, 16
    params = init_params(k_w, C_in, dim_in)

    # Batch of well-conditioned SPD inputs: x[b,c] = A A^T / n + 0.5 I.
    a = jax.random.normal(k_x, (B, C_in, dim_in, dim_in), dtype=jnp.float32)
    x = (jnp.einsum('bcij,bckj->bcik', a, a) / dim_in
         + 0.5 * jnp.eye(dim_in, dtype=jnp.float32))

    out = jax.block_until_ready(bimap_1_normal_forward(params, x))
    assert out.shape == (B, C_in, dim_in, dim_in)

    # --- stage-wise correctness of each Pallas kernel vs. plain-JAX einsums ---
    hp = jax.lax.Precision.HIGHEST
    w = params['bimap_w']

    y_k = bimap_pallas(w, x)
    y_r = jnp.einsum('oikp,bikq,oiqr->bopr', w, x, w, precision=hp)
    assert jnp.allclose(y_k, y_r, atol=1e-3, rtol=1e-3)

    g_mean = _bary_geom(y_k.reshape(B * C_in, dim_in, dim_in), iters=1)
    p = (_sym_mat_fn(params['bn_bias'], jnp.sqrt)
         @ _sym_mat_fn(g_mean, lambda s: 1.0 / jnp.sqrt(s)))
    z_k = congruence_pallas(p, y_k)
    z_r = jnp.einsum('ij,bcjk,lk->bcil', p, y_k, p, precision=hp)
    assert jnp.allclose(z_k, z_r, atol=1e-3, rtol=1e-3)

    s, u = jnp.linalg.eigh(z_k)
    s_rect = jnp.maximum(s, _REEIG_EPS)
    r_k = reeig_recon_pallas(u, s_rect)
    r_r = jnp.einsum('bcij,bcj,bckj->bcik', u, s_rect, u, precision=hp)
    assert jnp.allclose(r_k, r_r, atol=1e-3, rtol=1e-3)

    # Output of the full forward stays symmetric (SPD up to float error).
    assert jnp.allclose(out, jnp.swapaxes(out, -1, -2), atol=1e-3)

    print("KERNEL_OK")
</pallas_src>

<mosaic_0001>
module attributes {stable_mosaic.version = 11 : i64} {
  func.func @_bimap_kernel(%arg0: i32, %arg1: memref<4x4x16x16xf32, #tpu.memory_space<vmem>>, %arg2: memref<4x4x16x16xf32, #tpu.memory_space<vmem>>, %arg3: memref<2x4x16x16xf32, #tpu.memory_space<vmem>>, %arg4: memref<2x4x16x16xf32, #tpu.memory_space<vmem>>) attributes {dimension_semantics = [#tpu.dimension_semantics<arbitrary>], iteration_bounds = array<i64: 1>, scalar_prefetch = 0 : i64, scratch_operands = 0 : i64, tpu.core_type = #tpu.core_type<tc>, window_params = [{pipeline_mode = #tpu.pipeline_mode<synchronous>, transform_indices = @transform_0, window_bounds = array<i64: 4, 4, 16, 16>}, {pipeline_mode = #tpu.pipeline_mode<synchronous>, transform_indices = @transform_1, window_bounds = array<i64: 4, 4, 16, 16>}, {pipeline_mode = #tpu.pipeline_mode<synchronous>, transform_indices = @transform_2, window_bounds = array<i64: 2, 4, 16, 16>}, {pipeline_mode = #tpu.pipeline_mode<synchronous>, transform_indices = @transform_3, window_bounds = array<i64: 2, 4, 16, 16>}]} {
    %cst = arith.constant 0.000000e+00 : f32
    %0 = vector.broadcast %cst : f32 to vector<16x16xf32>
    %c0 = arith.constant 0 : index
    %c0_0 = arith.constant 0 : index
    %c0_1 = arith.constant 0 : index
    %c0_2 = arith.constant 0 : index
    %1 = vector.load %arg3[%c0, %c0_0, %c0_1, %c0_2] : memref<2x4x16x16xf32, #tpu.memory_space<vmem>>, vector<1x1x16x16xf32>
    %2 = vector.shape_cast %1 : vector<1x1x16x16xf32> to vector<16x16xf32>
    %c0_3 = arith.constant 0 : index
    %c0_4 = arith.constant 0 : index
    %c0_5 = arith.constant 0 : index
    %c0_6 = arith.constant 0 : index
    %3 = vector.load %arg2[%c0_3, %c0_4, %c0_5, %c0_6] : memref<4x4x16x16xf32, #tpu.memory_space<vmem>>, vector<1x1x16x16xf32>
    %4 = vector.shape_cast %3 : vector<1x1x16x16xf32> to vector<16x16xf32>
    %cst_7 = arith.constant dense<0.000000e+00> : vector<16x16xf32>
    %5 = tpu.matmul %2, %4, %cst_7 {dimension_numbers = #tpu.dot_dimension_numbers<[1], [0], [0], [1], [0, 0, 1, 1], [], []>} : vector<16x16xf32>, vector<16x16xf32>, vector<16x16xf32> -> vector<16x16xf32>
    %c0_8 = arith.constant 0 : index
    %c0_9 = arith.constant 0 : index
    %c0_10 = arith.constant 0 : index
    %c0_11 = arith.constant 0 : index
    %6 = vector.load %arg1[%c0_8, %c0_9, %c0_10, %c0_11] : memref<4x4x16x16xf32, #tpu.memory_space<vmem>>, vector<1x1x16x16xf32>
    %7 = vector.shape_cast %6 : vector<1x1x16x16xf32> to vector<16x16xf32>
    %cst_12 = arith.constant dense<0.000000e+00> : vector<16x16xf32>
    %8 = tpu.matmul %7, %5, %cst_12 {dimension_numbers = #tpu.dot_dimension_numbers<[1], [0], [0], [1], [0, 0, 1, 1], [], []>} : vector<16x16xf32>, vector<16x16xf32>, vector<16x16xf32> -> vector<16x16xf32>
    %9 = arith.addf %0, %8 : vector<16x16xf32>
    %c0_13 = arith.constant 0 : index
    %c1 = arith.constant 1 : index
    %c0_14 = arith.constant 0 : index
    %c0_15 = arith.constant 0 : index
    %10 = vector.load %arg3[%c0_13, %c1, %c0_14, %c0_15] : memref<2x4x16x16xf32, #tpu.memory_space<vmem>>, vector<1x1x16x16xf32>
    %11 = vector.shape_cast %10 : vector<1x1x16x16xf32> to vector<16x16xf32>
    %c0_16 = arith.constant 0 : index
    %c1_17 = arith.constant 1 : index
    %c0_18 = arith.constant 0 : index
    %c0_19 = arith.constant 0 : index
    %12 = vector.load %arg2[%c0_16, %c1_17, %c0_18, %c0_19] : memref<4x4x16x16xf32, #tpu.memory_space<vmem>>, vector<1x1x16x16xf32>
    %13 = vector.shape_cast %12 : vector<1x1x16x16xf32> to vector<16x16xf32>
    %cst_20 = arith.constant dense<0.000000e+00> : vector<16x16xf32>
    %14 = tpu.matmul %11, %13, %cst_20 {dimension_numbers = #tpu.dot_dimension_numbers<[1], [0], [0], [1], [0, 0, 1, 1], [], []>} : vector<16x16xf32>, vector<16x16xf32>, vector<16x16xf32> -> vector<16x16xf32>
    %c0_21 = arith.constant 0 : index
    %c1_22 = arith.constant 1 : index
    %c0_23 = arith.constant 0 : index
    %c0_24 = arith.constant 0 : index
    %15 = vector.load %arg1[%c0_21, %c1_22, %c0_23, %c0_24] : memref<4x4x16x16xf32, #tpu.memory_space<vmem>>, vector<1x1x16x16xf32>
    %16 = vector.shape_cast %15 : vector<1x1x16x16xf32> to vector<16x16xf32>
    %cst_25 = arith.constant dense<0.000000e+00> : vector<16x16xf32>
    %17 = tpu.matmul %16, %14, %cst_25 {dimension_numbers = #tpu.dot_dimension_numbers<[1], [0], [0], [1], [0, 0, 1, 1], [], []>} : vector<16x16xf32>, vector<16x16xf32>, vector<16x16xf32> -> vector<16x16xf32>
    %18 = arith.addf %9, %17 : vector<16x16xf32>
    %c0_26 = arith.constant 0 : index
    %c2 = arith.constant 2 : index
    %c0_27 = arith.constant 0 : index
    %c0_28 = arith.constant 0 : index
    %19 = vector.load %arg3[%c0_26, %c2, %c0_27, %c0_28] : memref<2x4x16x16xf32, #tpu.memory_space<vmem>>, vector<1x1x16x16xf32>
    %20 = vector.shape_cast %19 : vector<1x1x16x16xf32> to vector<16x16xf32>
    %c0_29 = arith.constant 0 : index
    %c2_30 = arith.constant 2 : index
    %c0_31 = arith.constant 0 : index
    %c0_32 = arith.constant 0 : index
    %21 = vector.load %arg2[%c0_29, %c2_30, %c0_31, %c0_32] : memref<4x4x16x16xf32, #tpu.memory_space<vmem>>, vector<1x1x16x16xf32>
    %22 = vector.shape_cast %21 : vector<1x1x16x16xf32> to vector<16x16xf32>
    %cst_33 = arith.constant dense<0.000000e+00> : vector<16x16xf32>
    %23 = tpu.matmul %20, %22, %cst_33 {dimension_numbers = #tpu.dot_dimension_numbers<[1], [0], [0], [1], [0, 0, 1, 1], [], []>} : vector<16x16xf32>, vector<16x16xf32>, vector<16x16xf32> -> vector<16x16xf32>
    %c0_34 = arith.constant 0 : index
    %c2_35 = arith.constant 2 : index
    %c0_36 = arith.constant 0 : index
    %c0_37 = arith.constant 0 : index
    %24 = vector.load %arg1[%c0_34, %c2_35, %c0_36, %c0_37] : memref<4x4x16x16xf32, #tpu.memory_space<vmem>>, vector<1x1x16x16xf32>
    %25 = vector.shape_cast %24 : vector<1x1x16x16xf32> to vector<16x16xf32>
    %cst_38 = arith.constant dense<0.000000e+00> : vector<16x16xf32>
    %26 = tpu.matmul %25, %23, %cst_38 {dimension_numbers = #tpu.dot_dimension_numbers<[1], [0], [0], [1], [0, 0, 1, 1], [], []>} : vector<16x16xf32>, vector<16x16xf32>, vector<16x16xf32> -> vector<16x16xf32>
    %27 = arith.addf %18, %26 : vector<16x16xf32>
    %c0_39 = arith.constant 0 : index
    %c3 = arith.constant 3 : index
    %c0_40 = arith.constant 0 : index
    %c0_41 = arith.constant 0 : index
    %28 = vector.load %arg3[%c0_39, %c3, %c0_40, %c0_41] : memref<2x4x16x16xf32, #tpu.memory_space<vmem>>, vector<1x1x16x16xf32>
    %29 = vector.shape_cast %28 : vector<1x1x16x16xf32> to vector<16x16xf32>
    %c0_42 = arith.constant 0 : index
    %c3_43 = arith.constant 3 : index
    %c0_44 = arith.constant 0 : index
    %c0_45 = arith.constant 0 : index
    %30 = vector.load %arg2[%c0_42, %c3_43, %c0_44, %c0_45] : memref<4x4x16x16xf32, #tpu.memory_space<vmem>>, vector<1x1x16x16xf32>
    %31 = vector.shape_cast %30 : vector<1x1x16x16xf32> to vector<16x16xf32>
    %cst_46 = arith.constant dense<0.000000e+00> : vector<16x16xf32>
    %32 = tpu.matmul %29, %31, %cst_46 {dimension_numbers = #tpu.dot_dimension_numbers<[1], [0], [0], [1], [0, 0, 1, 1], [], []>} : vector<16x16xf32>, vector<16x16xf32>, vector<16x16xf32> -> vector<16x16xf32>
    %c0_47 = arith.constant 0 : index
    %c3_48 = arith.constant 3 : index
    %c0_49 = arith.constant 0 : index
    %c0_50 = arith.constant 0 : index
    %33 = vector.load %arg1[%c0_47, %c3_48, %c0_49, %c0_50] : memref<4x4x16x16xf32, #tpu.memory_space<vmem>>, vector<1x1x16x16xf32>
    %34 = vector.shape_cast %33 : vector<1x1x16x16xf32> to vector<16x16xf32>
    %cst_51 = arith.constant dense<0.000000e+00> : vector<16x16xf32>
    %35 = tpu.matmul %34, %32, %cst_51 {dimension_numbers = #tpu.dot_dimension_numbers<[1], [0], [0], [1], [0, 0, 1, 1], [], []>} : vector<16x16xf32>, vector<16x16xf32>, vector<16x16xf32> -> vector<16x16xf32>
    %36 = arith.addf %27, %35 : vector<16x16xf32>
    %c0_52 = arith.constant 0 : index
    %c0_53 = arith.constant 0 : index
    %c0_54 = arith.constant 0 : index
    %c0_55 = arith.constant 0 : index
    %37 = vector.load %arg4[%c0_52, %c0_53, %c0_54, %c0_55] : memref<2x4x16x16xf32, #tpu.memory_space<vmem>>, vector<1x1x16x16xf32>
    %38 = vector.shape_cast %37 : vector<1x1x16x16xf32> to vector<16x16xf32>
    %39 = vector.shape_cast %36 : vector<16x16xf32> to vector<1x1x16x16xf32>
    tpu.vector_store %arg4[%c0_52, %c0_53, %c0_54, %c0_55], %39 {strides = array<i32>} : memref<2x4x16x16xf32, #tpu.memory_space<vmem>>, vector<1x1x16x16xf32>,
    %cst_56 = arith.constant 0.000000e+00 : f32
    %40 = vector.broadcast %cst_56 : f32 to vector<16x16xf32>
    %c0_57 = arith.constant 0 : index
    %c0_58 = arith.constant 0 : index
    %c0_59 = arith.constant 0 : index
    %c0_60 = arith.constant 0 : index
    %41 = vector.load %arg3[%c0_57, %c0_58, %c0_59, %c0_60] : memref<2x4x16x16xf32, #tpu.memory_space<vmem>>, vector<1x1x16x16xf32>
    %42 = vector.shape_cast %41 : vector<1x1x16x16xf32> to vector<16x16xf32>
    %c1_61 = arith.constant 1 : index
    %c0_62 = arith.constant 0 : index
    %c0_63 = arith.constant 0 : index
    %c0_64 = arith.constant 0 : index
    %43 = vector.load %arg2[%c1_61, %c0_62, %c0_63, %c0_64] : memref<4x4x16x16xf32, #tpu.memory_space<vmem>>, vector<1x1x16x16xf32>
    %44 = vector.shape_cast %43 : vector<1x1x16x16xf32> to vector<16x16xf32>
    %cst_65 = arith.constant dense<0.000000e+00> : vector<16x16xf32>
    %45 = tpu.matmul %42, %44, %cst_65 {dimension_numbers = #tpu.dot_dimension_numbers<[1], [0], [0], [1], [0, 0, 1, 1], [], []>} : vector<16x16xf32>, vector<16x16xf32>, vector<16x16xf32> -> vector<16x16xf32>
    %c1_66 = arith.constant 1 : index
    %c0_67 = arith.constant 0 : index
    %c0_68 = arith.constant 0 : index
    %c0_69 = arith.constant 0 : index
    %46 = vector.load %arg1[%c1_66, %c0_67, %c0_68, %c0_69] : memref<4x4x16x16xf32, #tpu.memory_space<vmem>>, vector<1x1x16x16xf32>
    %47 = vector.shape_cast %46 : vector<1x1x16x16xf32> to vector<16x16xf32>
    %cst_70 = arith.constant dense<0.000000e+00> : vector<16x16xf32>
    %48 = tpu.matmul %47, %45, %cst_70 {dimension_numbers = #tpu.dot_dimension_numbers<[1], [0], [0], [1], [0, 0, 1, 1], [], []>} : vector<16x16xf32>, vector<16x16xf32>, vector<16x16xf32> -> vector<16x16xf32>
    %49 = arith.addf %40, %48 : vector<16x16xf32>
    %c0_71 = arith.constant 0 : index
    %c1_72 = arith.constant 1 : index
    %c0_73 = arith.constant 0 : index
    %c0_74 = arith.constant 0 : index
    %50 = vector.load %arg3[%c0_71, %c1_72, %c0_73, %c0_74] : memref<2x4x16x16xf32, #tpu.memory_space<vmem>>, vector<1x1x16x16xf32>
    %51 = vector.shape_cast %50 : vector<1x1x16x16xf32> to vector<16x16xf32>
    %c1_75 = arith.constant 1 : index
    %c1_76 = arith.constant 1 : index
    %c0_77 = arith.constant 0 : index
    %c0_78 = arith.constant 0 : index
    %52 = vector.load %arg2[%c1_75, %c1_76, %c0_77, %c0_78] : memref<4x4x16x16xf32, #tpu.memory_space<vmem>>, vector<1x1x16x16xf32>
    %53 = vector.shape_cast %52 : vector<1x1x16x16xf32> to vector<16x16xf32>
    %cst_79 = arith.constant dense<0.000000e+00> : vector<16x16xf32>
    %54 = tpu.matmul %51, %53, %cst_79 {dimension_numbers = #tpu.dot_dimension_numbers<[1], [0], [0], [1], [0, 0, 1, 1], [], []>} : vector<16x16xf32>, vector<16x16xf32>, vector<16x16xf32> -> vector<16x16xf32>
    %c1_80 = arith.constant 1 : index
    %c1_81 = arith.constant 1 : index
    %c0_82 = arith.constant 0 : index
    %c0_83 = arith.constant 0 : index
    %55 = vector.load %arg1[%c1_80, %c1_81, %c0_82, %c0_83] : memref<4x4x16x16xf32, #tpu.memory_space<vmem>>, vector<1x1x16x16xf32>
    %56 = vector.shape_cast %55 : vector<1x1x16x16xf32> to vector<16x16xf32>
    %cst_84 = arith.constant dense<0.000000e+00> : vector<16x16xf32>
    %57 = tpu.matmul %56, %54, %cst_84 {dimension_numbers = #tpu.dot_dimension_numbers<[1], [0], [0], [1], [0, 0, 1, 1], [], []>} : vector<16x16xf32>, vector<16x16xf32>, vector<16x16xf32> -> vector<16x16xf32>
    %58 = arith.addf %49, %57 : vector<16x16xf32>
    %c0_85 = arith.constant 0 : index
    %c2_86 = arith.constant 2 : index
    %c0_87 = arith.constant 0 : index
    %c0_88 = arith.constant 0 : index
    %59 = vector.load %arg3[%c0_85, %c2_86, %c0_87, %c0_88] : memref<2x4x16x16xf32, #tpu.memory_space<vmem>>, vector<1x1x16x16xf32>
    %60 = vector.shape_cast %59 : vector<1x1x16x16xf32> to vector<16x16xf32>
    %c1_89 = arith.constant 1 : index
    %c2_90 = arith.constant 2 : index
    %c0_91 = arith.constant 0 : index
    %c0_92 = arith.constant 0 : index
    %61 = vector.load %arg2[%c1_89, %c2_90, %c0_91, %c0_92] : memref<4x4x16x16xf32, #tpu.memory_space<vmem>>, vector<1x1x16x16xf32>
    %62 = vector.shape_cast %61 : vector<1x1x16x16xf32> to vector<16x16xf32>
    %cst_93 = arith.constant dense<0.000000e+00> : vector<16x16xf32>
    %63 = tpu.matmul %60, %62, %cst_93 {dimension_numbers = #tpu.dot_dimension_numbers<[1], [0], [0], [1], [0, 0, 1, 1], [], []>} : vector<16x16xf32>, vector<16x16xf32>, vector<16x16xf32> -> vector<16x16xf32>
    %c1_94 = arith.constant 1 : index
    %c2_95 = arith.constant 2 : index
    %c0_96 = arith.constant 0 : index
    %c0_97 = arith.constant 0 : index
    %64 = vector.load %arg1[%c1_94, %c2_95, %c0_96, %c0_97] : memref<4x4x16x16xf32, #tpu.memory_space<vmem>>, vector<1x1x16x16xf32>
    %65 = vector.shape_cast %64 : vector<1x1x16x16xf32> to vector<16x16xf32>
    %cst_98 = arith.constant dense<0.000000e+00> : vector<16x16xf32>
    %66 = tpu.matmul %65, %63, %cst_98 {dimension_numbers = #tpu.dot_dimension_numbers<[1], [0], [0], [1], [0, 0, 1, 1], [], []>} : vector<16x16xf32>, vector<16x16xf32>, vector<16x16xf32> -> vector<16x16xf32>
    %67 = arith.addf %58, %66 : vector<16x16xf32>
    %c0_99 = arith.constant 0 : index
    %c3_100 = arith.constant 3 : index
    %c0_101 = arith.constant 0 : index
    %c0_102 = arith.constant 0 : index
    %68 = vector.load %arg3[%c0_99, %c3_100, %c0_101, %c0_102] : memref<2x4x16x16xf32, #tpu.memory_space<vmem>>, vector<1x1x16x16xf32>
    %69 = vector.shape_cast %68 : vector<1x1x16x16xf32> to vector<16x16xf32>
    %c1_103 = arith.constant 1 : index
    %c3_104 = arith.constant 3 : index
    %c0_105 = arith.constant 0 : index
    %c0_106 = arith.constant 0 : index
    %70 = vector.load %arg2[%c1_103, %c3_104, %c0_105, %c0_106] : memref<4x4x16x16xf32, #tpu.memory_space<vmem>>, vector<1x1x16x16xf32>
    %71 = vector.shape_cast %70 : vector<1x1x16x16xf32> to vector<16x16xf32>
    %cst_107 = arith.constant dense<0.000000e+00> : vector<16x16xf32>
    %72 = tpu.matmul %69, %71, %cst_107 {dimension_numbers = #tpu.dot_dimension_numbers<[1], [0], [0], [1], [0, 0, 1, 1], [], []>} : vector<16x16xf32>, vector<16x16xf32>, vector<16x16xf32> -> vector<16x16xf32>
    %c1_108 = arith.constant 1 : index
    %c3_109 = arith.constant 3 : index
    %c0_110 = arith.constant 0 : index
    %c0_111 = arith.constant 0 : index
    %73 = vector.load %arg1[%c1_108, %c3_109, %c0_110, %c0_111] : memref<4x4x16x16xf32, #tpu.memory_space<vmem>>, vector<1x1x16x16xf32>
    %74 = vector.shape_cast %73 : vector<1x1x16x16xf32> to vector<16x16xf32>
    %cst_112 = arith.constant dense<0.000000e+00> : vector<16x16xf32>
    %75 = tpu.matmul %74, %72, %cst_112 {dimension_numbers = #tpu.dot_dimension_numbers<[1], [0], [0], [1], [0, 0, 1, 1], [], []>} : vector<16x16xf32>, vector<16x16xf32>, vector<16x16xf32> -> vector<16x16xf32>
    %76 = arith.addf %67, %75 : vector<16x16xf32>
    %c0_113 = arith.constant 0 : index
    %c1_114 = arith.constant 1 : index
    %c0_115 = arith.constant 0 : index
    %c0_116 = arith.constant 0 : index
    %77 = vector.load %arg4[%c0_113, %c1_114, %c0_115, %c0_116] : memref<2x4x16x16xf32, #tpu.memory_space<vmem>>, vector<1x1x16x16xf32>
    %78 = vector.shape_cast %77 : vector<1x1x16x16xf32> to vector<16x16xf32>
    %79 = vector.shape_cast %76 : vector<16x16xf32> to vector<1x1x16x16xf32>
    tpu.vector_store %arg4[%c0_113, %c1_114, %c0_115, %c0_116], %79 {strides = array<i32>} : memref<2x4x16x16xf32, #tpu.memory_space<vmem>>, vector<1x1x16x16xf32>,
    %cst_117 = arith.constant 0.000000e+00 : f32
    %80 = vector.broadcast %cst_117 : f32 to vector<16x16xf32>
    %c0_118 = arith.constant 0 : index
    %c0_119 = arith.constant 0 : index
    %c0_120 = arith.constant 0 : index
    %c0_121 = arith.constant 0 : index
    %81 = vector.load %arg3[%c0_118, %c0_119, %c0_120, %c0_121] : memref<2x4x16x16xf32, #tpu.memory_space<vmem>>, vector<1x1x16x16xf32>
    %82 = vector.shape_cast %81 : vector<1x1x16x16xf32> to vector<16x16xf32>
    %c2_122 = arith.constant 2 : index
    %c0_123 = arith.constant 0 : index
    %c0_124 = arith.constant 0 : index
    %c0_125 = arith.constant 0 : index
    %83 = vector.load %arg2[%c2_122, %c0_123, %c0_124, %c0_125] : memref<4x4x16x16xf32, #tpu.memory_space<vmem>>, vector<1x1x16x16xf32>
    %84 = vector.shape_cast %83 : vector<1x1x16x16xf32> to vector<16x16xf32>
    %cst_126 = arith.constant dense<0.000000e+00> : vector<16x16xf32>
    %85 = tpu.matmul %82, %84, %cst_126 {dimension_numbers = #tpu.dot_dimension_numbers<[1], [0], [0], [1], [0, 0, 1, 1], [], []>} : vector<16x16xf32>, vector<16x16xf32>, vector<16x16xf32> -> vector<16x16xf32>
    %c2_127 = arith.constant 2 : index
    %c0_128 = arith.constant 0 : index
    %c0_129 = arith.constant 0 : index
    %c0_130 = arith.constant 0 : index
    %86 = vector.load %arg1[%c2_127, %c0_128, %c0_129, %c0_130] : memref<4x4x16x16xf32, #tpu.memory_space<vmem>>, vector<1x1x16x16xf32>
    %87 = vector.shape_cast %86 : vector<1x1x16x16xf32> to vector<16x16xf32>
    %cst_131 = arith.constant dense<0.000000e+00> : vector<16x16xf32>
    %88 = tpu.matmul %87, %85, %cst_131 {dimension_numbers = #tpu.dot_dimension_numbers<[1], [0], [0], [1], [0, 0, 1, 1], [], []>} : vector<16x16xf32>, vector<16x16xf32>, vector<16x16xf32> -> vector<16x16xf32>
    %89 = arith.addf %80, %88 : vector<16x16xf32>
    %c0_132 = arith.constant 0 : index
    %c1_133 = arith.constant 1 : index
    %c0_134 = arith.constant 0 : index
    %c0_135 = arith.constant 0 : index
    %90 = vector.load %arg3[%c0_132, %c1_133, %c0_134, %c0_135] : memref<2x4x16x16xf32, #tpu.memory_space<vmem>>, vector<1x1x16x16xf32>
    %91 = vector.shape_cast %90 : vector<1x1x16x16xf32> to vector<16x16xf32>
    %c2_136 = arith.constant 2 : index
    %c1_137 = arith.constant 1 : index
    %c0_138 = arith.constant 0 : index
    %c0_139 = arith.constant 0 : index
    %92 = vector.load %arg2[%c2_136, %c1_137, %c0_138, %c0_139] : memref<4x4x16x16xf32, #tpu.memory_space<vmem>>, vector<1x1x16x16xf32>
    %93 = vector.shape_cast %92 : vector<1x1x16x16xf32> to vector<16x16xf32>
    %cst_140 = arith.constant dense<0.000000e+00> : vector<16x16xf32>
    %94 = tpu.matmul %91, %93, %cst_140 {dimension_numbers = #tpu.dot_dimension_numbers<[1], [0], [0], [1], [0, 0, 1, 1], [], []>} : vector<16x16xf32>, vector<16x16xf32>, vector<16x16xf32> -> vector<16x16xf32>
    %c2_141 = arith.constant 2 : index
    %c1_142 = arith.constant 1 : index
    %c0_143 = arith.constant 0 : index
    %c0_144 = arith.constant 0 : index
    %95 = vector.load %arg1[%c2_141, %c1_142, %c0_143, %c0_144] : memref<4x4x16x16xf32, #tpu.memory_space<vmem>>, vector<1x1x16x16xf32>
    %96 = vector.shape_cast %95 : vector<1x1x16x16xf32> to vector<16x16xf32>
    %cst_145 = arith.constant dense<0.000000e+00> : vector<16x16xf32>
    %97 = tpu.matmul %96, %94, %cst_145 {dimension_numbers = #tpu.dot_dimension_numbers<[1], [0], [0], [1], [0, 0, 1, 1], [], []>} : vector<16x16xf32>, vector<16x16xf32>, vector<16x16xf32> -> vector<16x16xf32>
    %98 = arith.addf %89, %97 : vector<16x16xf32>
    %c0_146 = arith.constant 0 : index
    %c2_147 = arith.constant 2 : index
    %c0_148 = arith.constant 0 : index
    %c0_149 = arith.constant 0 : index
    %99 = vector.load %arg3[%c0_146, %c2_147, %c0_148, %c0_149] : memref<2x4x16x16xf32, #tpu.memory_space<vmem>>, vector<1x1x16x16xf32>
    %100 = vector.shape_cast %99 : vector<1x1x16x16xf32> to vector<16x16xf32>
    %c2_150 = arith.constant 2 : index
    %c2_151 = arith.constant 2 : index
    %c0_152 = arith.constant 0 : index
    %c0_153 = arith.constant 0 : index
    %101 = vector.load %arg2[%c2_150, %c2_151, %c0_152, %c0_153] : memref<4x4x16x16xf32, #tpu.memory_space<vmem>>, vector<1x1x16x16xf32>
    %102 = vector.shape_cast %101 : vector<1x1x16x16xf32> to vector<16x16xf32>
    %cst_154 = arith.constant dense<0.000000e+00> : vector<16x16xf32>
    %103 = tpu.matmul %100, %102, %cst_154 {dimension_numbers = #tpu.dot_dimension_numbers<[1], [0], [0], [1], [0, 0, 1, 1], [], []>} : vector<16x16xf32>, vector<16x16xf32>, vector<16x16xf32> -> vector<16x16xf32>
    %c2_155 = arith.constant 2 : index
    %c2_156 = arith.constant 2 : index
    %c0_157 = arith.constant 0 : index
    %c0_158 = arith.constant 0 : index
    %104 = vector.load %arg1[%c2_155, %c2_156, %c0_157, %c0_158] : memref<4x4x16x16xf32, #tpu.memory_space<vmem>>, vector<1x1x16x16xf32>
    %105 = vector.shape_cast %104 : vector<1x1x16x16xf32> to vector<16x16xf32>
    %cst_159 = arith.constant dense<0.000000e+00> : vector<16x16xf32>
    %106 = tpu.matmul %105, %103, %cst_159 {dimension_numbers = #tpu.dot_dimension_numbers<[1], [0], [0], [1], [0, 0, 1, 1], [], []>} : vector<16x16xf32>, vector<16x16xf32>, vector<16x16xf32> -> vector<16x16xf32>
    %107 = arith.addf %98, %106 : vector<16x16xf32>
    %c0_160 = arith.constant 0 : index
    %c3_161 = arith.constant 3 : index
    %c0_162 = arith.constant 0 : index
    %c0_163 = arith.constant 0 : index
    %108 = vector.load %arg3[%c0_160, %c3_161, %c0_162, %c0_163] : memref<2x4x16x16xf32, #tpu.memory_space<vmem>>, vector<1x1x16x16xf32>
    %109 = vector.shape_cast %108 : vector<1x1x16x16xf32> to vector<16x16xf32>
    %c2_164 = arith.constant 2 : index
    %c3_165 = arith.constant 3 : index
    %c0_166 = arith.constant 0 : index
    %c0_167 = arith.constant 0 : index
    %110 = vector.load %arg2[%c2_164, %c3_165, %c0_166, %c0_167] : memref<4x4x16x16xf32, #tpu.memory_space<vmem>>, vector<1x1x16x16xf32>
    %111 = vector.shape_cast %110 : vector<1x1x16x16xf32> to vector<16x16xf32>
    %cst_168 = arith.constant dense<0.000000e+00> : vector<16x16xf32>
    %112 = tpu.matmul %109, %111, %cst_168 {dimension_numbers = #tpu.dot_dimension_numbers<[1], [0], [0], [1], [0, 0, 1, 1], [], []>} : vector<16x16xf32>, vector<16x16xf32>, vector<16x16xf32> -> vector<16x16xf32>
    %c2_169 = arith.constant 2 : index
    %c3_170 = arith.constant 3 : index
    %c0_171 = arith.constant 0 : index
    %c0_172 = arith.constant 0 : index
    %113 = vector.load %arg1[%c2_169, %c3_170, %c0_171, %c0_172] : memref<4x4x16x16xf32, #tpu.memory_space<vmem>>, vector<1x1x16x16xf32>
    %114 = vector.shape_cast %113 : vector<1x1x16x16xf32> to vector<16x16xf32>
    %cst_173 = arith.constant dense<0.000000e+00> : vector<16x16xf32>
    %115 = tpu.matmul %114, %112, %cst_173 {dimension_numbers = #tpu.dot_dimension_numbers<[1], [0], [0], [1], [0, 0, 1, 1], [], []>} : vector<16x16xf32>, vector<16x16xf32>, vector<16x16xf32> -> vector<16x16xf32>
    %116 = arith.addf %107, %115 : vector<16x16xf32>
    %c0_174 = arith.constant 0 : index
    %c2_175 = arith.constant 2 : index
    %c0_176 = arith.constant 0 : index
    %c0_177 = arith.constant 0 : index
    %117 = vector.load %arg4[%c0_174, %c2_175, %c0_176, %c0_177] : memref<2x4x16x16xf32, #tpu.memory_space<vmem>>, vector<1x1x16x16xf32>
    %118 = vector.shape_cast %117 : vector<1x1x16x16xf32> to vector<16x16xf32>
    %119 = vector.shape_cast %116 : vector<16x16xf32> to vector<1x1x16x16xf32>
    tpu.vector_store %arg4[%c0_174, %c2_175, %c0_176, %c0_177], %119 {strides = array<i32>} : memref<2x4x16x16xf32, #tpu.memory_space<vmem>>, vector<1x1x16x16xf32>,
    %cst_178 = arith.constant 0.000000e+00 : f32
    %120 = vector.broadcast %cst_178 : f32 to vector<16x16xf32>
    %c0_179 = arith.constant 0 : index
    %c0_180 = arith.constant 0 : index
    %c0_181 = arith.constant 0 : index
    %c0_182 = arith.constant 0 : index
    %121 = vector.load %arg3[%c0_179, %c0_180, %c0_181, %c0_182] : memref<2x4x16x16xf32, #tpu.memory_space<vmem>>, vector<1x1x16x16xf32>
    %122 = vector.shape_cast %121 : vector<1x1x16x16xf32> to vector<16x16xf32>
    %c3_183 = arith.constant 3 : index
    %c0_184 = arith.constant 0 : index
    %c0_185 = arith.constant 0 : index
    %c0_186 = arith.constant 0 : index
    %123 = vector.load %arg2[%c3_183, %c0_184, %c0_185, %c0_186] : memref<4x4x16x16xf32, #tpu.memory_space<vmem>>, vector<1x1x16x16xf32>
    %124 = vector.shape_cast %123 : vector<1x1x16x16xf32> to vector<16x16xf32>
    %cst_187 = arith.constant dense<0.000000e+00> : vector<16x16xf32>
    %125 = tpu.matmul %122, %124, %cst_187 {dimension_numbers = #tpu.dot_dimension_numbers<[1], [0], [0], [1], [0, 0, 1, 1], [], []>} : vector<16x16xf32>, vector<16x16xf32>, vector<16x16xf32> -> vector<16x16xf32>
    %c3_188 = arith.constant 3 : index
    %c0_189 = arith.constant 0 : index
    %c0_190 = arith.constant 0 : index
    %c0_191 = arith.constant 0 : index
    %126 = vector.load %arg1[%c3_188, %c0_189, %c0_190, %c0_191] : memref<4x4x16x16xf32, #tpu.memory_space<vmem>>, vector<1x1x16x16xf32>
    %127 = vector.shape_cast %126 : vector<1x1x16x16xf32> to vector<16x16xf32>
    %cst_192 = arith.constant dense<0.000000e+00> : vector<16x16xf32>
    %128 = tpu.matmul %127, %125, %cst_192 {dimension_numbers = #tpu.dot_dimension_numbers<[1], [0], [0], [1], [0, 0, 1, 1], [], []>} : vector<16x16xf32>, vector<16x16xf32>, vector<16x16xf32> -> vector<16x16xf32>
    %129 = arith.addf %120, %128 : vector<16x16xf32>
    %c0_193 = arith.constant 0 : index
    %c1_194 = arith.constant 1 : index
    %c0_195 = arith.constant 0 : index
    %c0_196 = arith.constant 0 : index
    %130 = vector.load %arg3[%c0_193, %c1_194, %c0_195, %c0_196] : memref<2x4x16x16xf32, #tpu.memory_space<vmem>>, vector<1x1x16x16xf32>
    %131 = vector.shape_cast %130 : vector<1x1x16x16xf32> to vector<16x16xf32>
    %c3_197 = arith.constant 3 : index
    %c1_198 = arith.constant 1 : index
    %c0_199 = arith.constant 0 : index
    %c0_200 = arith.constant 0 : index
    %132 = vector.load %arg2[%c3_197, %c1_198, %c0_199, %c0_200] : memref<4x4x16x16xf32, #tpu.memory_space<vmem>>, vector<1x1x16x16xf32>
    %133 = vector.shape_cast %132 : vector<1x1x16x16xf32> to vector<16x16xf32>
    %cst_201 = arith.constant dense<0.000000e+00> : vector<16x16xf32>
    %134 = tpu.matmul %131, %133, %cst_201 {dimension_numbers = #tpu.dot_dimension_numbers<[1], [0], [0], [1], [0, 0, 1, 1], [], []>} : vector<16x16xf32>, vector<16x16xf32>, vector<16x16xf32> -> vector<16x16xf32>
    %c3_202 = arith.constant 3 : index
    %c1_203 = arith.constant 1 : index
    %c0_204 = arith.constant 0 : index
    %c0_205 = arith.constant 0 : index
    %135 = vector.load %arg1[%c3_202, %c1_203, %c0_204, %c0_205] : memref<4x4x16x16xf32, #tpu.memory_space<vmem>>, vector<1x1x16x16xf32>
    %136 = vector.shape_cast %135 : vector<1x1x16x16xf32> to vector<16x16xf32>
    %cst_206 = arith.constant dense<0.000000e+00> : vector<16x16xf32>
    %137 = tpu.matmul %136, %134, %cst_206 {dimension_numbers = #tpu.dot_dimension_numbers<[1], [0], [0], [1], [0, 0, 1, 1], [], []>} : vector<16x16xf32>, vector<16x16xf32>, vector<16x16xf32> -> vector<16x16xf32>
    %138 = arith.addf %129, %137 : vector<16x16xf32>
    %c0_207 = arith.constant 0 : index
    %c2_208 = arith.constant 2 : index
    %c0_209 = arith.constant 0 : index
    %c0_210 = arith.constant 0 : index
    %139 = vector.load %arg3[%c0_207, %c2_208, %c0_209, %c0_210] : memref<2x4x16x16xf32, #tpu.memory_space<vmem>>, vector<1x1x16x16xf32>
    %140 = vector.shape_cast %139 : vector<1x1x16x16xf32> to vector<16x16xf32>
    %c3_211 = arith.constant 3 : index
    %c2_212 = arith.constant 2 : index
    %c0_213 = arith.constant 0 : index
    %c0_214 = arith.constant 0 : index
    %141 = vector.load %arg2[%c3_211, %c2_212, %c0_213, %c0_214] : memref<4x4x16x16xf32, #tpu.memory_space<vmem>>, vector<1x1x16x16xf32>
    %142 = vector.shape_cast %141 : vector<1x1x16x16xf32> to vector<16x16xf32>
    %cst_215 = arith.constant dense<0.000000e+00> : vector<16x16xf32>
    %143 = tpu.matmul %140, %142, %cst_215 {dimension_numbers = #tpu.dot_dimension_numbers<[1], [0], [0], [1], [0, 0, 1, 1], [], []>} : vector<16x16xf32>, vector<16x16xf32>, vector<16x16xf32> -> vector<16x16xf32>
    %c3_216 = arith.constant 3 : index
    %c2_217 = arith.constant 2 : index
    %c0_218 = arith.constant 0 : index
    %c0_219 = arith.constant 0 : index
    %144 = vector.load %arg1[%c3_216, %c2_217, %c0_218, %c0_219] : memref<4x4x16x16xf32, #tpu.memory_space<vmem>>, vector<1x1x16x16xf32>
    %145 = vector.shape_cast %144 : vector<1x1x16x16xf32> to vector<16x16xf32>
    %cst_220 = arith.constant dense<0.000000e+00> : vector<16x16xf32>
    %146 = tpu.matmul %145, %143, %cst_220 {dimension_numbers = #tpu.dot_dimension_numbers<[1], [0], [0], [1], [0, 0, 1, 1], [], []>} : vector<16x16xf32>, vector<16x16xf32>, vector<16x16xf32> -> vector<16x16xf32>
    %147 = arith.addf %138, %146 : vector<16x16xf32>
    %c0_221 = arith.constant 0 : index
    %c3_222 = arith.constant 3 : index
    %c0_223 = arith.constant 0 : index
    %c0_224 = arith.constant 0 : index
    %148 = vector.load %arg3[%c0_221, %c3_222, %c0_223, %c0_224] : memref<2x4x16x16xf32, #tpu.memory_space<vmem>>, vector<1x1x16x16xf32>
    %149 = vector.shape_cast %148 : vector<1x1x16x16xf32> to vector<16x16xf32>
    %c3_225 = arith.constant 3 : index
    %c3_226 = arith.constant 3 : index
    %c0_227 = arith.constant 0 : index
    %c0_228 = arith.constant 0 : index
    %150 = vector.load %arg2[%c3_225, %c3_226, %c0_227, %c0_228] : memref<4x4x16x16xf32, #tpu.memory_space<vmem>>, vector<1x1x16x16xf32>
    %151 = vector.shape_cast %150 : vector<1x1x16x16xf32> to vector<16x16xf32>
    %cst_229 = arith.constant dense<0.000000e+00> : vector<16x16xf32>
    %152 = tpu.matmul %149, %151, %cst_229 {dimension_numbers = #tpu.dot_dimension_numbers<[1], [0], [0], [1], [0, 0, 1, 1], [], []>} : vector<16x16xf32>, vector<16x16xf32>, vector<16x16xf32> -> vector<16x16xf32>
    %c3_230 = arith.constant 3 : index
    %c3_231 = arith.constant 3 : index
    %c0_232 = arith.constant 0 : index
    %c0_233 = arith.constant 0 : index
    %153 = vector.load %arg1[%c3_230, %c3_231, %c0_232, %c0_233] : memref<4x4x16x16xf32, #tpu.memory_space<vmem>>, vector<1x1x16x16xf32>
    %154 = vector.shape_cast %153 : vector<1x1x16x16xf32> to vector<16x16xf32>
    %cst_234 = arith.constant dense<0.000000e+00> : vector<16x16xf32>
    %155 = tpu.matmul %154, %152, %cst_234 {dimension_numbers = #tpu.dot_dimension_numbers<[1], [0], [0], [1], [0, 0, 1, 1], [], []>} : vector<16x16xf32>, vector<16x16xf32>, vector<16x16xf32> -> vector<16x16xf32>
    %156 = arith.addf %147, %155 : vector<16x16xf32>
    %c0_235 = arith.constant 0 : index
    %c3_236 = arith.constant 3 : index
    %c0_237 = arith.constant 0 : index
    %c0_238 = arith.constant 0 : index
    %157 = vector.load %arg4[%c0_235, %c3_236, %c0_237, %c0_238] : memref<2x4x16x16xf32, #tpu.memory_space<vmem>>, vector<1x1x16x16xf32>
    %158 = vector.shape_cast %157 : vector<1x1x16x16xf32> to vector<16x16xf32>
    %159 = vector.shape_cast %156 : vector<16x16xf32> to vector<1x1x16x16xf32>
    tpu.vector_store %arg4[%c0_235, %c3_236, %c0_237, %c0_238], %159 {strides = array<i32>} : memref<2x4x16x16xf32, #tpu.memory_space<vmem>>, vector<1x1x16x16xf32>,
    %cst_239 = arith.constant 0.000000e+00 : f32
    %160 = vector.broadcast %cst_239 : f32 to vector<16x16xf32>
    %c1_240 = arith.constant 1 : index
    %c0_241 = arith.constant 0 : index
    %c0_242 = arith.constant 0 : index
    %c0_243 = arith.constant 0 : index
    %161 = vector.load %arg3[%c1_240, %c0_241, %c0_242, %c0_243] : memref<2x4x16x16xf32, #tpu.memory_space<vmem>>, vector<1x1x16x16xf32>
    %162 = vector.shape_cast %161 : vector<1x1x16x16xf32> to vector<16x16xf32>
    %c0_244 = arith.constant 0 : index
    %c0_245 = arith.constant 0 : index
    %c0_246 = arith.constant 0 : index
    %c0_247 = arith.constant 0 : index
    %163 = vector.load %arg2[%c0_244, %c0_245, %c0_246, %c0_247] : memref<4x4x16x16xf32, #tpu.memory_space<vmem>>, vector<1x1x16x16xf32>
    %164 = vector.shape_cast %163 : vector<1x1x16x16xf32> to vector<16x16xf32>
    %cst_248 = arith.constant dense<0.000000e+00> : vector<16x16xf32>
    %165 = tpu.matmul %162, %164, %cst_248 {dimension_numbers = #tpu.dot_dimension_numbers<[1], [0], [0], [1], [0, 0, 1, 1], [], []>} : vector<16x16xf32>, vector<16x16xf32>, vector<16x16xf32> -> vector<16x16xf32>
    %c0_249 = arith.constant 0 : index
    %c0_250 = arith.constant 0 : index
    %c0_251 = arith.constant 0 : index
    %c0_252 = arith.constant 0 : index
    %166 = vector.load %arg1[%c0_249, %c0_250, %c0_251, %c0_252] : memref<4x4x16x16xf32, #tpu.memory_space<vmem>>, vector<1x1x16x16xf32>
    %167 = vector.shape_cast %166 : vector<1x1x16x16xf32> to vector<16x16xf32>
    %cst_253 = arith.constant dense<0.000000e+00> : vector<16x16xf32>
    %168 = tpu.matmul %167, %165, %cst_253 {dimension_numbers = #tpu.dot_dimension_numbers<[1], [0], [0], [1], [0, 0, 1, 1], [], []>} : vector<16x16xf32>, vector<16x16xf32>, vector<16x16xf32> -> vector<16x16xf32>
    %169 = arith.addf %160, %168 : vector<16x16xf32>
    %c1_254 = arith.constant 1 : index
    %c1_255 = arith.constant 1 : index
    %c0_256 = arith.constant 0 : index
    %c0_257 = arith.constant 0 : index
    %170 = vector.load %arg3[%c1_254, %c1_255, %c0_256, %c0_257] : memref<2x4x16x16xf32, #tpu.memory_space<vmem>>, vector<1x1x16x16xf32>
    %171 = vector.shape_cast %170 : vector<1x1x16x16xf32> to vector<16x16xf32>
    %c0_258 = arith.constant 0 : index
    %c1_259 = arith.constant 1 : index
    %c0_260 = arith.constant 0 : index
    %c0_261 = arith.constant 0 : index
    %172 = vector.load %arg2[%c0_258, %c1_259, %c0_260, %c0_261] : memref<4x4x16x16xf32, #tpu.memory_space<vmem>>, vector<1x1x16x16xf32>
    %173 = vector.shape_cast %172 : vector<1x1x16x16xf32> to vector<16x16xf32>
    %cst_262 = arith.constant dense<0.000000e+00> : vector<16x16xf32>
    %174 = tpu.matmul %171, %173, %cst_262 {dimension_numbers = #tpu.dot_dimension_numbers<[1], [0], [0], [1], [0, 0, 1, 1], [], []>} : vector<16x16xf32>, vector<16x16xf32>, vector<16x16xf32> -> vector<16x16xf32>
    %c0_263 = arith.constant 0 : index
    %c1_264 = arith.constant 1 : index
    %c0_265 = arith.constant 0 : index
    %c0_266 = arith.constant 0 : index
    %175 = vector.load %arg1[%c0_263, %c1_264, %c0_265, %c0_266] : memref<4x4x16x16xf32, #tpu.memory_space<vmem>>, vector<1x1x16x16xf32>
    %176 = vector.shape_cast %175 : vector<1x1x16x16xf32> to vector<16x16xf32>
    %cst_267 = arith.constant dense<0.000000e+00> : vector<16x16xf32>
    %177 = tpu.matmul %176, %174, %cst_267 {dimension_numbers = #tpu.dot_dimension_numbers<[1], [0], [0], [1], [0, 0, 1, 1], [], []>} : vector<16x16xf32>, vector<16x16xf32>, vector<16x16xf32> -> vector<16x16xf32>
    %178 = arith.addf %169, %177 : vector<16x16xf32>
    %c1_268 = arith.constant 1 : index
    %c2_269 = arith.constant 2 : index
    %c0_270 = arith.constant 0 : index
    %c0_271 = arith.constant 0 : index
    %179 = vector.load %arg3[%c1_268, %c2_269, %c0_270, %c0_271] : memref<2x4x16x16xf32, #tpu.memory_space<vmem>>, vector<1x1x16x16xf32>
    %180 = vector.shape_cast %179 : vector<1x1x16x16xf32> to vector<16x16xf32>
    %c0_272 = arith.constant 0 : index
    %c2_273 = arith.constant 2 : index
    %c0_274 = arith.constant 0 : index
    %c0_275 = arith.constant 0 : index
    %181 = vector.load %arg2[%c0_272, %c2_273, %c0_274, %c0_275] : memref<4x4x16x16xf32, #tpu.memory_space<vmem>>, vector<1x1x16x16xf32>
    %182 = vector.shape_cast %181 : vector<1x1x16x16xf32> to vector<16x16xf32>
    %cst_276 = arith.constant dense<0.000000e+00> : vector<16x16xf32>
    %183 = tpu.matmul %180, %182, %cst_276 {dimension_numbers = #tpu.dot_dimension_numbers<[1], [0], [0], [1], [0, 0, 1, 1], [], []>} : vector<16x16xf32>, vector<16x16xf32>, vector<16x16xf32> -> vector<16x16xf32>
    %c0_277 = arith.constant 0 : index
    %c2_278 = arith.constant 2 : index
    %c0_279 = arith.constant 0 : index
    %c0_280 = arith.constant 0 : index
    %184 = vector.load %arg1[%c0_277, %c2_278, %c0_279, %c0_280] : memref<4x4x16x16xf32, #tpu.memory_space<vmem>>, vector<1x1x16x16xf32>
    %185 = vector.shape_cast %184 : vector<1x1x16x16xf32> to vector<16x16xf32>
    %cst_281 = arith.constant dense<0.000000e+00> : vector<16x16xf32>
    %186 = tpu.matmul %185, %183, %cst_281 {dimension_numbers = #tpu.dot_dimension_numbers<[1], [0], [0], [1], [0, 0, 1, 1], [], []>} : vector<16x16xf32>, vector<16x16xf32>, vector<16x16xf32> -> vector<16x16xf32>
    %187 = arith.addf %178, %186 : vector<16x16xf32>
    %c1_282 = arith.constant 1 : index
    %c3_283 = arith.constant 3 : index
    %c0_284 = arith.constant 0 : index
    %c0_285 = arith.constant 0 : index
    %188 = vector.load %arg3[%c1_282, %c3_283, %c0_284, %c0_285] : memref<2x4x16x16xf32, #tpu.memory_space<vmem>>, vector<1x1x16x16xf32>
    %189 = vector.shape_cast %188 : vector<1x1x16x16xf32> to vector<16x16xf32>
    %c0_286 = arith.constant 0 : index
    %c3_287 = arith.constant 3 : index
    %c0_288 = arith.constant 0 : index
    %c0_289 = arith.constant 0 : index
    %190 = vector.load %arg2[%c0_286, %c3_287, %c0_288, %c0_289] : memref<4x4x16x16xf32, #tpu.memory_space<vmem>>, vector<1x1x16x16xf32>
    %191 = vector.shape_cast %190 : vector<1x1x16x16xf32> to vector<16x16xf32>
    %cst_290 = arith.constant dense<0.000000e+00> : vector<16x16xf32>
    %192 = tpu.matmul %189, %191, %cst_290 {dimension_numbers = #tpu.dot_dimension_numbers<[1], [0], [0], [1], [0, 0, 1, 1], [], []>} : vector<16x16xf32>, vector<16x16xf32>, vector<16x16xf32> -> vector<16x16xf32>
    %c0_291 = arith.constant 0 : index
    %c3_292 = arith.constant 3 : index
    %c0_293 = arith.constant 0 : index
    %c0_294 = arith.constant 0 : index
    %193 = vector.load %arg1[%c0_291, %c3_292, %c0_293, %c0_294] : memref<4x4x16x16xf32, #tpu.memory_space<vmem>>, vector<1x1x16x16xf32>
    %194 = vector.shape_cast %193 : vector<1x1x16x16xf32> to vector<16x16xf32>
    %cst_295 = arith.constant dense<0.000000e+00> : vector<16x16xf32>
    %195 = tpu.matmul %194, %192, %cst_295 {dimension_numbers = #tpu.dot_dimension_numbers<[1], [0], [0], [1], [0, 0, 1, 1], [], []>} : vector<16x16xf32>, vector<16x16xf32>, vector<16x16xf32> -> vector<16x16xf32>
    %196 = arith.addf %187, %195 : vector<16x16xf32>
    %c1_296 = arith.constant 1 : index
    %c0_297 = arith.constant 0 : index
    %c0_298 = arith.constant 0 : index
    %c0_299 = arith.constant 0 : index
    %197 = vector.load %arg4[%c1_296, %c0_297, %c0_298, %c0_299] : memref<2x4x16x16xf32, #tpu.memory_space<vmem>>, vector<1x1x16x16xf32>
    %198 = vector.shape_cast %197 : vector<1x1x16x16xf32> to vector<16x16xf32>
    %199 = vector.shape_cast %196 : vector<16x16xf32> to vector<1x1x16x16xf32>
    tpu.vector_store %arg4[%c1_296, %c0_297, %c0_298, %c0_299], %199 {strides = array<i32>} : memref<2x4x16x16xf32, #tpu.memory_space<vmem>>, vector<1x1x16x16xf32>,
    %cst_300 = arith.constant 0.000000e+00 : f32
    %200 = vector.broadcast %cst_300 : f32 to vector<16x16xf32>
    %c1_301 = arith.constant 1 : index
    %c0_302 = arith.constant 0 : index
    %c0_303 = arith.constant 0 : index
    %c0_304 = arith.constant 0 : index
    %201 = vector.load %arg3[%c1_301, %c0_302, %c0_303, %c0_304] : memref<2x4x16x16xf32, #tpu.memory_space<vmem>>, vector<1x1x16x16xf32>
    %202 = vector.shape_cast %201 : vector<1x1x16x16xf32> to vector<16x16xf32>
    %c1_305 = arith.constant 1 : index
    %c0_306 = arith.constant 0 : index
    %c0_307 = arith.constant 0 : index
    %c0_308 = arith.constant 0 : index
    %203 = vector.load %arg2[%c1_305, %c0_306, %c0_307, %c0_308] : memref<4x4x16x16xf32, #tpu.memory_space<vmem>>, vector<1x1x16x16xf32>
    %204 = vector.shape_cast %203 : vector<1x1x16x16xf32> to vector<16x16xf32>
    %cst_309 = arith.constant dense<0.000000e+00> : vector<16x16xf32>
    %205 = tpu.matmul %202, %204, %cst_309 {dimension_numbers = #tpu.dot_dimension_numbers<[1], [0], [0], [1], [0, 0, 1, 1], [], []>} : vector<16x16xf32>, vector<16x16xf32>, vector<16x16xf32> -> vector<16x16xf32>
    %c1_310 = arith.constant 1 : index
    %c0_311 = arith.constant 0 : index
    %c0_312 = arith.constant 0 : index
    %c0_313 = arith.constant 0 : index
    %206 = vector.load %arg1[%c1_310, %c0_311, %c0_312, %c0_313] : memref<4x4x16x16xf32, #tpu.memory_space<vmem>>, vector<1x1x16x16xf32>
    %207 = vector.shape_cast %206 : vector<1x1x16x16xf32> to vector<16x16xf32>
    %cst_314 = arith.constant dense<0.000000e+00> : vector<16x16xf32>
    %208 = tpu.matmul %207, %205, %cst_314 {dimension_numbers = #tpu.dot_dimension_numbers<[1], [0], [0], [1], [0, 0, 1, 1], [], []>} : vector<16x16xf32>, vector<16x16xf32>, vector<16x16xf32> -> vector<16x16xf32>
    %209 = arith.addf %200, %208 : vector<16x16xf32>
    %c1_315 = arith.constant 1 : index
    %c1_316 = arith.constant 1 : index
    %c0_317 = arith.constant 0 : index
    %c0_318 = arith.constant 0 : index
    %210 = vector.load %arg3[%c1_315, %c1_316, %c0_317, %c0_318] : memref<2x4x16x16xf32, #tpu.memory_space<vmem>>, vector<1x1x16x16xf32>
    %211 = vector.shape_cast %210 : vector<1x1x16x16xf32> to vector<16x16xf32>
    %c1_319 = arith.constant 1 : index
    %c1_320 = arith.constant 1 : index
    %c0_321 = arith.constant 0 : index
    %c0_322 = arith.constant 0 : index
    %212 = vector.load %arg2[%c1_319, %c1_320, %c0_321, %c0_322] : memref<4x4x16x16xf32, #tpu.memory_space<vmem>>, vector<1x1x16x16xf32>
    %213 = vector.shape_cast %212 : vector<1x1x16x16xf32> to vector<16x16xf32>
    %cst_323 = arith.constant dense<0.000000e+00> : vector<16x16xf32>
    %214 = tpu.matmul %211, %213, %cst_323 {dimension_numbers = #tpu.dot_dimension_numbers<[1], [0], [0], [1], [0, 0, 1, 1], [], []>} : vector<16x16xf32>, vector<16x16xf32>, vector<16x16xf32> -> vector<16x16xf32>
    %c1_324 = arith.constant 1 : index
    %c1_325 = arith.constant 1 : index
    %c0_326 = arith.constant 0 : index
    %c0_327 = arith.constant 0 : index
    %215 = vector.load %arg1[%c1_324, %c1_325, %c0_326, %c0_327] : memref<4x4x16x16xf32, #tpu.memory_space<vmem>>, vector<1x1x16x16xf32>
    %216 = vector.shape_cast %215 : vector<1x1x16x16xf32> to vector<16x16xf32>
    %cst_328 = arith.constant dense<0.000000e+00> : vector<16x16xf32>
    %217 = tpu.matmul %216, %214, %cst_328 {dimension_numbers = #tpu.dot_dimension_numbers<[1], [0], [0], [1], [0, 0, 1, 1], [], []>} : vector<16x16xf32>, vector<16x16xf32>, vector<16x16xf32> -> vector<16x16xf32>
    %218 = arith.addf %209, %217 : vector<16x16xf32>
    %c1_329 = arith.constant 1 : index
    %c2_330 = arith.constant 2 : index
    %c0_331 = arith.constant 0 : index
    %c0_332 = arith.constant 0 : index
    %219 = vector.load %arg3[%c1_329, %c2_330, %c0_331, %c0_332] : memref<2x4x16x16xf32, #tpu.memory_space<vmem>>, vector<1x1x16x16xf32>
    %220 = vector.shape_cast %219 : vector<1x1x16x16xf32> to vector<16x16xf32>
    %c1_333 = arith.constant 1 : index
    %c2_334 = arith.constant 2 : index
    %c0_335 = arith.constant 0 : index
    %c0_336 = arith.constant 0 : index
    %221 = vector.load %arg2[%c1_333, %c2_334, %c0_335, %c0_336] : memref<4x4x16x16xf32, #tpu.memory_space<vmem>>, vector<1x1x16x16xf32>
    %222 = vector.shape_cast %221 : vector<1x1x16x16xf32> to vector<16x16xf32>
    %cst_337 = arith.constant dense<0.000000e+00> : vector<16x16xf32>
    %223 = tpu.matmul %220, %222, %cst_337 {dimension_numbers = #tpu.dot_dimension_numbers<[1], [0], [0], [1], [0, 0, 1, 1], [], []>} : vector<16x16xf32>, vector<16x16xf32>, vector<16x16xf32> -> vector<16x16xf32>
    %c1_338 = arith.constant 1 : index
    %c2_339 = arith.constant 2 : index
    %c0_340 = arith.constant 0 : index
    %c0_341 = arith.constant 0 : index
    %224 = vector.load %arg1[%c1_338, %c2_339, %c0_340, %c0_341] : memref<4x4x16x16xf32, #tpu.memory_space<vmem>>, vector<1x1x16x16xf32>
    %225 = vector.shape_cast %224 : vector<1x1x16x16xf32> to vector<16x16xf32>
    %cst_342 = arith.constant dense<0.000000e+00> : vector<16x16xf32>
    %226 = tpu.matmul %225, %223, %cst_342 {dimension_numbers = #tpu.dot_dimension_numbers<[1], [0], [0], [1], [0, 0, 1, 1], [], []>} : vector<16x16xf32>, vector<16x16xf32>, vector<16x16xf32> -> vector<16x16xf32>
    %227 = arith.addf %218, %226 : vector<16x16xf32>
    %c1_343 = arith.constant 1 : index
    %c3_344 = arith.constant 3 : index
    %c0_345 = arith.constant 0 : index
    %c0_346 = arith.constant 0 : index
    %228 = vector.load %arg3[%c1_343, %c3_344, %c0_345, %c0_346] : memref<2x4x16x16xf32, #tpu.memory_space<vmem>>, vector<1x1x16x16xf32>
    %229 = vector.shape_cast %228 : vector<1x1x16x16xf32> to vector<16x16xf32>
    %c1_347 = arith.constant 1 : index
    %c3_348 = arith.constant 3 : index
    %c0_349 = arith.constant 0 : index
    %c0_350 = arith.constant 0 : index
    %230 = vector.load %arg2[%c1_347, %c3_348, %c0_349, %c0_350] : memref<4x4x16x16xf32, #tpu.memory_space<vmem>>, vector<1x1x16x16xf32>
    %231 = vector.shape_cast %230 : vector<1x1x16x16xf32> to vector<16x16xf32>
    %cst_351 = arith.constant dense<0.000000e+00> : vector<16x16xf32>
    %232 = tpu.matmul %229, %231, %cst_351 {dimension_numbers = #tpu.dot_dimension_numbers<[1], [0], [0], [1], [0, 0, 1, 1], [], []>} : vector<16x16xf32>, vector<16x16xf32>, vector<16x16xf32> -> vector<16x16xf32>
    %c1_352 = arith.constant 1 : index
    %c3_353 = arith.constant 3 : index
    %c0_354 = arith.constant 0 : index
    %c0_355 = arith.constant 0 : index
    %233 = vector.load %arg1[%c1_352, %c3_353, %c0_354, %c0_355] : memref<4x4x16x16xf32, #tpu.memory_space<vmem>>, vector<1x1x16x16xf32>
    %234 = vector.shape_cast %233 : vector<1x1x16x16xf32> to vector<16x16xf32>
    %cst_356 = arith.constant dense<0.000000e+00> : vector<16x16xf32>
    %235 = tpu.matmul %234, %232, %cst_356 {dimension_numbers = #tpu.dot_dimension_numbers<[1], [0], [0], [1], [0, 0, 1, 1], [], []>} : vector<16x16xf32>, vector<16x16xf32>, vector<16x16xf32> -> vector<16x16xf32>
    %236 = arith.addf %227, %235 : vector<16x16xf32>
    %c1_357 = arith.constant 1 : index
    %c1_358 = arith.constant 1 : index
    %c0_359 = arith.constant 0 : index
    %c0_360 = arith.constant 0 : index
    %237 = vector.load %arg4[%c1_357, %c1_358, %c0_359, %c0_360] : memref<2x4x16x16xf32, #tpu.memory_space<vmem>>, vector<1x1x16x16xf32>
    %238 = vector.shape_cast %237 : vector<1x1x16x16xf32> to vector<16x16xf32>
    %239 = vector.shape_cast %236 : vector<16x16xf32> to vector<1x1x16x16xf32>
    tpu.vector_store %arg4[%c1_357, %c1_358, %c0_359, %c0_360], %239 {strides = array<i32>} : memref<2x4x16x16xf32, #tpu.memory_space<vmem>>, vector<1x1x16x16xf32>,
    %cst_361 = arith.constant 0.000000e+00 : f32
    %240 = vector.broadcast %cst_361 : f32 to vector<16x16xf32>
    %c1_362 = arith.constant 1 : index
    %c0_363 = arith.constant 0 : index
    %c0_364 = arith.constant 0 : index
    %c0_365 = arith.constant 0 : index
    %241 = vector.load %arg3[%c1_362, %c0_363, %c0_364, %c0_365] : memref<2x4x16x16xf32, #tpu.memory_space<vmem>>, vector<1x1x16x16xf32>
    %242 = vector.shape_cast %241 : vector<1x1x16x16xf32> to vector<16x16xf32>
    %c2_366 = arith.constant 2 : index
    %c0_367 = arith.constant 0 : index
    %c0_368 = arith.constant 0 : index
    %c0_369 = arith.constant 0 : index
    %243 = vector.load %arg2[%c2_366, %c0_367, %c0_368, %c0_369] : memref<4x4x16x16xf32, #tpu.memory_space<vmem>>, vector<1x1x16x16xf32>
    %244 = vector.shape_cast %243 : vector<1x1x16x16xf32> to vector<16x16xf32>
    %cst_370 = arith.constant dense<0.000000e+00> : vector<16x16xf32>
    %245 = tpu.matmul %242, %244, %cst_370 {dimension_numbers = #tpu.dot_dimension_numbers<[1], [0], [0], [1], [0, 0, 1, 1], [], []>} : vector<16x16xf32>, vector<16x16xf32>, vector<16x16xf32> -> vector<16x16xf32>
    %c2_371 = arith.constant 2 : index
    %c0_372 = arith.constant 0 : index
    %c0_373 = arith.constant 0 : index
    %c0_374 = arith.constant 0 : index
    %246 = vector.load %arg1[%c2_371, %c0_372, %c0_373, %c0_374] : memref<4x4x16x16xf32, #tpu.memory_space<vmem>>, vector<1x1x16x16xf32>
    %247 = vector.shape_cast %246 : vector<1x1x16x16xf32> to vector<16x16xf32>
    %cst_375 = arith.constant dense<0.000000e+00> : vector<16x16xf32>
    %248 = tpu.matmul %247, %245, %cst_375 {dimension_numbers = #tpu.dot_dimension_numbers<[1], [0], [0], [1], [0, 0, 1, 1], [], []>} : vector<16x16xf32>, vector<16x16xf32>, vector<16x16xf32> -> vector<16x16xf32>
    %249 = arith.addf %240, %248 : vector<16x16xf32>
    %c1_376 = arith.constant 1 : index
    %c1_377 = arith.constant 1 : index
    %c0_378 = arith.constant 0 : index
    %c0_379 = arith.constant 0 : index
    %250 = vector.load %arg3[%c1_376, %c1_377, %c0_378, %c0_379] : memref<2x4x16x16xf32, #tpu.memory_space<vmem>>, vector<1x1x16x16xf32>
    %251 = vector.shape_cast %250 : vector<1x1x16x16xf32> to vector<16x16xf32>
    %c2_380 = arith.constant 2 : index
    %c1_381 = arith.constant 1 : index
    %c0_382 = arith.constant 0 : index
    %c0_383 = arith.constant 0 : index
    %252 = vector.load %arg2[%c2_380, %c1_381, %c0_382, %c0_383] : memref<4x4x16x16xf32, #tpu.memory_space<vmem>>, vector<1x1x16x16xf32>
    %253 = vector.shape_cast %252 : vector<1x1x16x16xf32> to vector<16x16xf32>
    %cst_384 = arith.constant dense<0.000000e+00> : vector<16x16xf32>
    %254 = tpu.matmul %251, %253, %cst_384 {dimension_numbers = #tpu.dot_dimension_numbers<[1], [0], [0], [1], [0, 0, 1, 1], [], []>} : vector<16x16xf32>, vector<16x16xf32>, vector<16x16xf32> -> vector<16x16xf32>
    %c2_385 = arith.constant 2 : index
    %c1_386 = arith.constant 1 : index
    %c0_387 = arith.constant 0 : index
    %c0_388 = arith.constant 0 : index
    %255 = vector.load %arg1[%c2_385, %c1_386, %c0_387, %c0_388] : memref<4x4x16x16xf32, #tpu.memory_space<vmem>>, vector<1x1x16x16xf32>
    %256 = vector.shape_cast %255 : vector<1x1x16x16xf32> to vector<16x16xf32>
    %cst_389 = arith.constant dense<0.000000e+00> : vector<16x16xf32>
    %257 = tpu.matmul %256, %254, %cst_389 {dimension_numbers = #tpu.dot_dimension_numbers<[1], [0], [0], [1], [0, 0, 1, 1], [], []>} : vector<16x16xf32>, vector<16x16xf32>, vector<16x16xf32> -> vector<16x16xf32>
    %258 = arith.addf %249, %257 : vector<16x16xf32>
    %c1_390 = arith.constant 1 : index
    %c2_391 = arith.constant 2 : index
    %c0_392 = arith.constant 0 : index
    %c0_393 = arith.constant 0 : index
    %259 = vector.load %arg3[%c1_390, %c2_391, %c0_392, %c0_393] : memref<2x4x16x16xf32, #tpu.memory_space<vmem>>, vector<1x1x16x16xf32>
    %260 = vector.shape_cast %259 : vector<1x1x16x16xf32> to vector<16x16xf32>
    %c2_394 = arith.constant 2 : index
    %c2_395 = arith.constant 2 : index
    %c0_396 = arith.constant 0 : index
    %c0_397 = arith.constant 0 : index
    %261 = vector.load %arg2[%c2_394, %c2_395, %c0_396, %c0_397] : memref<4x4x16x16xf32, #tpu.memory_space<vmem>>, vector<1x1x16x16xf32>
    %262 = vector.shape_cast %261 : vector<1x1x16x16xf32> to vector<16x16xf32>
    %cst_398 = arith.constant dense<0.000000e+00> : vector<16x16xf32>
    %263 = tpu.matmul %260, %262, %cst_398 {dimension_numbers = #tpu.dot_dimension_numbers<[1], [0], [0], [1], [0, 0, 1, 1], [], []>} : vector<16x16xf32>, vector<16x16xf32>, vector<16x16xf32> -> vector<16x16xf32>
    %c2_399 = arith.constant 2 : index
    %c2_400 = arith.constant 2 : index
    %c0_401 = arith.constant 0 : index
    %c0_402 = arith.constant 0 : index
    %264 = vector.load %arg1[%c2_399, %c2_400, %c0_401, %c0_402] : memref<4x4x16x16xf32, #tpu.memory_space<vmem>>, vector<1x1x16x16xf32>
    %265 = vector.shape_cast %264 : vector<1x1x16x16xf32> to vector<16x16xf32>
    %cst_403 = arith.constant dense<0.000000e+00> : vector<16x16xf32>
    %266 = tpu.matmul %265, %263, %cst_403 {dimension_numbers = #tpu.dot_dimension_numbers<[1], [0], [0], [1], [0, 0, 1, 1], [], []>} : vector<16x16xf32>, vector<16x16xf32>, vector<16x16xf32> -> vector<16x16xf32>
    %267 = arith.addf %258, %266 : vector<16x16xf32>
    %c1_404 = arith.constant 1 : index
    %c3_405 = arith.constant 3 : index
    %c0_406 = arith.constant 0 : index
    %c0_407 = arith.constant 0 : index
    %268 = vector.load %arg3[%c1_404, %c3_405, %c0_406, %c0_407] : memref<2x4x16x16xf32, #tpu.memory_space<vmem>>, vector<1x1x16x16xf32>
    %269 = vector.shape_cast %268 : vector<1x1x16x16xf32> to vector<16x16xf32>
    %c2_408 = arith.constant 2 : index
    %c3_409 = arith.constant 3 : index
    %c0_410 = arith.constant 0 : index
    %c0_411 = arith.constant 0 : index
    %270 = vector.load %arg2[%c2_408, %c3_409, %c0_410, %c0_411] : memref<4x4x16x16xf32, #tpu.memory_space<vmem>>, vector<1x1x16x16xf32>
    %271 = vector.shape_cast %270 : vector<1x1x16x16xf32> to vector<16x16xf32>
    %cst_412 = arith.constant dense<0.000000e+00> : vector<16x16xf32>
    %272 = tpu.matmul %269, %271, %cst_412 {dimension_numbers = #tpu.dot_dimension_numbers<[1], [0], [0], [1], [0, 0, 1, 1], [], []>} : vector<16x16xf32>, vector<16x16xf32>, vector<16x16xf32> -> vector<16x16xf32>
    %c2_413 = arith.constant 2 : index
    %c3_414 = arith.constant 3 : index
    %c0_415 = arith.constant 0 : index
    %c0_416 = arith.constant 0 : index
    %273 = vector.load %arg1[%c2_413, %c3_414, %c0_415, %c0_416] : memref<4x4x16x16xf32, #tpu.memory_space<vmem>>, vector<1x1x16x16xf32>
    %274 = vector.shape_cast %273 : vector<1x1x16x16xf32> to vector<16x16xf32>
    %cst_417 = arith.constant dense<0.000000e+00> : vector<16x16xf32>
    %275 = tpu.matmul %274, %272, %cst_417 {dimension_numbers = #tpu.dot_dimension_numbers<[1], [0], [0], [1], [0, 0, 1, 1], [], []>} : vector<16x16xf32>, vector<16x16xf32>, vector<16x16xf32> -> vector<16x16xf32>
    %276 = arith.addf %267, %275 : vector<16x16xf32>
    %c1_418 = arith.constant 1 : index
    %c2_419 = arith.constant 2 : index
    %c0_420 = arith.constant 0 : index
    %c0_421 = arith.constant 0 : index
    %277 = vector.load %arg4[%c1_418, %c2_419, %c0_420, %c0_421] : memref<2x4x16x16xf32, #tpu.memory_space<vmem>>, vector<1x1x16x16xf32>
    %278 = vector.shape_cast %277 : vector<1x1x16x16xf32> to vector<16x16xf32>
    %279 = vector.shape_cast %276 : vector<16x16xf32> to vector<1x1x16x16xf32>
    tpu.vector_store %arg4[%c1_418, %c2_419, %c0_420, %c0_421], %279 {strides = array<i32>} : memref<2x4x16x16xf32, #tpu.memory_space<vmem>>, vector<1x1x16x16xf32>,
    %cst_422 = arith.constant 0.000000e+00 : f32
    %280 = vector.broadcast %cst_422 : f32 to vector<16x16xf32>
    %c1_423 = arith.constant 1 : index
    %c0_424 = arith.constant 0 : index
    %c0_425 = arith.constant 0 : index
    %c0_426 = arith.constant 0 : index
    %281 = vector.load %arg3[%c1_423, %c0_424, %c0_425, %c0_426] : memref<2x4x16x16xf32, #tpu.memory_space<vmem>>, vector<1x1x16x16xf32>
    %282 = vector.shape_cast %281 : vector<1x1x16x16xf32> to vector<16x16xf32>
    %c3_427 = arith.constant 3 : index
    %c0_428 = arith.constant 0 : index
    %c0_429 = arith.constant 0 : index
    %c0_430 = arith.constant 0 : index
    %283 = vector.load %arg2[%c3_427, %c0_428, %c0_429, %c0_430] : memref<4x4x16x16xf32, #tpu.memory_space<vmem>>, vector<1x1x16x16xf32>
    %284 = vector.shape_cast %283 : vector<1x1x16x16xf32> to vector<16x16xf32>
    %cst_431 = arith.constant dense<0.000000e+00> : vector<16x16xf32>
    %285 = tpu.matmul %282, %284, %cst_431 {dimension_numbers = #tpu.dot_dimension_numbers<[1], [0], [0], [1], [0, 0, 1, 1], [], []>} : vector<16x16xf32>, vector<16x16xf32>, vector<16x16xf32> -> vector<16x16xf32>
    %c3_432 = arith.constant 3 : index
    %c0_433 = arith.constant 0 : index
    %c0_434 = arith.constant 0 : index
    %c0_435 = arith.constant 0 : index
    %286 = vector.load %arg1[%c3_432, %c0_433, %c0_434, %c0_435] : memref<4x4x16x16xf32, #tpu.memory_space<vmem>>, vector<1x1x16x16xf32>
    %287 = vector.shape_cast %286 : vector<1x1x16x16xf32> to vector<16x16xf32>
    %cst_436 = arith.constant dense<0.000000e+00> : vector<16x16xf32>
    %288 = tpu.matmul %287, %285, %cst_436 {dimension_numbers = #tpu.dot_dimension_numbers<[1], [0], [0], [1], [0, 0, 1, 1], [], []>} : vector<16x16xf32>, vector<16x16xf32>, vector<16x16xf32> -> vector<16x16xf32>
    %289 = arith.addf %280, %288 : vector<16x16xf32>
    %c1_437 = arith.constant 1 : index
    %c1_438 = arith.constant 1 : index
    %c0_439 = arith.constant 0 : index
    %c0_440 = arith.constant 0 : index
    %290 = vector.load %arg3[%c1_437, %c1_438, %c0_439, %c0_440] : memref<2x4x16x16xf32, #tpu.memory_space<vmem>>, vector<1x1x16x16xf32>
    %291 = vector.shape_cast %290 : vector<1x1x16x16xf32> to vector<16x16xf32>
    %c3_441 = arith.constant 3 : index
    %c1_442 = arith.constant 1 : index
    %c0_443 = arith.constant 0 : index
    %c0_444 = arith.constant 0 : index
    %292 = vector.load %arg2[%c3_441, %c1_442, %c0_443, %c0_444] : memref<4x4x16x16xf32, #tpu.memory_space<vmem>>, vector<1x1x16x16xf32>
    %293 = vector.shape_cast %292 : vector<1x1x16x16xf32> to vector<16x16xf32>
    %cst_445 = arith.constant dense<0.000000e+00> : vector<16x16xf32>
    %294 = tpu.matmul %291, %293, %cst_445 {dimension_numbers = #tpu.dot_dimension_numbers<[1], [0], [0], [1], [0, 0, 1, 1], [], []>} : vector<16x16xf32>, vector<16x16xf32>, vector<16x16xf32> -> vector<16x16xf32>
    %c3_446 = arith.constant 3 : index
    %c1_447 = arith.constant 1 : index
    %c0_448 = arith.constant 0 : index
    %c0_449 = arith.constant 0 : index
    %295 = vector.load %arg1[%c3_446, %c1_447, %c0_448, %c0_449] : memref<4x4x16x16xf32, #tpu.memory_space<vmem>>, vector<1x1x16x16xf32>
    %296 = vector.shape_cast %295 : vector<1x1x16x16xf32> to vector<16x16xf32>
    %cst_450 = arith.constant dense<0.000000e+00> : vector<16x16xf32>
    %297 = tpu.matmul %296, %294, %cst_450 {dimension_numbers = #tpu.dot_dimension_numbers<[1], [0], [0], [1], [0, 0, 1, 1], [], []>} : vector<16x16xf32>, vector<16x16xf32>, vector<16x16xf32> -> vector<16x16xf32>
    %298 = arith.addf %289, %297 : vector<16x16xf32>
    %c1_451 = arith.constant 1 : index
    %c2_452 = arith.constant 2 : index
    %c0_453 = arith.constant 0 : index
    %c0_454 = arith.constant 0 : index
    %299 = vector.load %arg3[%c1_451, %c2_452, %c0_453, %c0_454] : memref<2x4x16x16xf32, #tpu.memory_space<vmem>>, vector<1x1x16x16xf32>
    %300 = vector.shape_cast %299 : vector<1x1x16x16xf32> to vector<16x16xf32>
    %c3_455 = arith.constant 3 : index
    %c2_456 = arith.constant 2 : index
    %c0_457 = arith.constant 0 : index
    %c0_458 = arith.constant 0 : index
    %301 = vector.load %arg2[%c3_455, %c2_456, %c0_457, %c0_458] : memref<4x4x16x16xf32, #tpu.memory_space<vmem>>, vector<1x1x16x16xf32>
    %302 = vector.shape_cast %301 : vector<1x1x16x16xf32> to vector<16x16xf32>
    %cst_459 = arith.constant dense<0.000000e+00> : vector<16x16xf32>
    %303 = tpu.matmul %300, %302, %cst_459 {dimension_numbers = #tpu.dot_dimension_numbers<[1], [0], [0], [1], [0, 0, 1, 1], [], []>} : vector<16x16xf32>, vector<16x16xf32>, vector<16x16xf32> -> vector<16x16xf32>
    %c3_460 = arith.constant 3 : index
    %c2_461 = arith.constant 2 : index
    %c0_462 = arith.constant 0 : index
    %c0_463 = arith.constant 0 : index
    %304 = vector.load %arg1[%c3_460, %c2_461, %c0_462, %c0_463] : memref<4x4x16x16xf32, #tpu.memory_space<vmem>>, vector<1x1x16x16xf32>
    %305 = vector.shape_cast %304 : vector<1x1x16x16xf32> to vector<16x16xf32>
    %cst_464 = arith.constant dense<0.000000e+00> : vector<16x16xf32>
    %306 = tpu.matmul %305, %303, %cst_464 {dimension_numbers = #tpu.dot_dimension_numbers<[1], [0], [0], [1], [0, 0, 1, 1], [], []>} : vector<16x16xf32>, vector<16x16xf32>, vector<16x16xf32> -> vector<16x16xf32>
    %307 = arith.addf %298, %306 : vector<16x16xf32>
    %c1_465 = arith.constant 1 : index
    %c3_466 = arith.constant 3 : index
    %c0_467 = arith.constant 0 : index
    %c0_468 = arith.constant 0 : index
    %308 = vector.load %arg3[%c1_465, %c3_466, %c0_467, %c0_468] : memref<2x4x16x16xf32, #tpu.memory_space<vmem>>, vector<1x1x16x16xf32>
    %309 = vector.shape_cast %308 : vector<1x1x16x16xf32> to vector<16x16xf32>
    %c3_469 = arith.constant 3 : index
    %c3_470 = arith.constant 3 : index
    %c0_471 = arith.constant 0 : index
    %c0_472 = arith.constant 0 : index
    %310 = vector.load %arg2[%c3_469, %c3_470, %c0_471, %c0_472] : memref<4x4x16x16xf32, #tpu.memory_space<vmem>>, vector<1x1x16x16xf32>
    %311 = vector.shape_cast %310 : vector<1x1x16x16xf32> to vector<16x16xf32>
    %cst_473 = arith.constant dense<0.000000e+00> : vector<16x16xf32>
    %312 = tpu.matmul %309, %311, %cst_473 {dimension_numbers = #tpu.dot_dimension_numbers<[1], [0], [0], [1], [0, 0, 1, 1], [], []>} : vector<16x16xf32>, vector<16x16xf32>, vector<16x16xf32> -> vector<16x16xf32>
    %c3_474 = arith.constant 3 : index
    %c3_475 = arith.constant 3 : index
    %c0_476 = arith.constant 0 : index
    %c0_477 = arith.constant 0 : index
    %313 = vector.load %arg1[%c3_474, %c3_475, %c0_476, %c0_477] : memref<4x4x16x16xf32, #tpu.memory_space<vmem>>, vector<1x1x16x16xf32>
    %314 = vector.shape_cast %313 : vector<1x1x16x16xf32> to vector<16x16xf32>
    %cst_478 = arith.constant dense<0.000000e+00> : vector<16x16xf32>
    %315 = tpu.matmul %314, %312, %cst_478 {dimension_numbers = #tpu.dot_dimension_numbers<[1], [0], [0], [1], [0, 0, 1, 1], [], []>} : vector<16x16xf32>, vector<16x16xf32>, vector<16x16xf32> -> vector<16x16xf32>
    %316 = arith.addf %307, %315 : vector<16x16xf32>
    %c1_479 = arith.constant 1 : index
    %c3_480 = arith.constant 3 : index
    %c0_481 = arith.constant 0 : index
    %c0_482 = arith.constant 0 : index
    %317 = vector.load %arg4[%c1_479, %c3_480, %c0_481, %c0_482] : memref<2x4x16x16xf32, #tpu.memory_space<vmem>>, vector<1x1x16x16xf32>
    %318 = vector.shape_cast %317 : vector<1x1x16x16xf32> to vector<16x16xf32>
    %319 = vector.shape_cast %316 : vector<16x16xf32> to vector<1x1x16x16xf32>
    tpu.vector_store %arg4[%c1_479, %c3_480, %c0_481, %c0_482], %319 {strides = array<i32>} : memref<2x4x16x16xf32, #tpu.memory_space<vmem>>, vector<1x1x16x16xf32>,
    return
  }
  func.func @transform_0(%arg0: i32) -> (i32, i32, i32, i32) {
    %c0_i32 = arith.constant 0 : i32
    %c0_i32_0 = arith.constant 0 : i32
    %c0_i32_1 = arith.constant 0 : i32
    %c0_i32_2 = arith.constant 0 : i32
    %c0_i32_3 = arith.constant 0 : i32
    return %c0_i32, %c0_i32_0, %c0_i32_1, %c0_i32_2 : i32, i32, i32, i32
  }
  func.func @transform_1(%arg0: i32) -> (i32, i32, i32, i32) {
    %c0_i32 = arith.constant 0 : i32
    %c0_i32_0 = arith.constant 0 : i32
    %c0_i32_1 = arith.constant 0 : i32
    %c0_i32_2 = arith.constant 0 : i32
    %c0_i32_3 = arith.constant 0 : i32
    return %c0_i32, %c0_i32_0, %c0_i32_1, %c0_i32_2 : i32, i32, i32, i32
  }
  func.func @transform_2(%arg0: i32) -> (i32, i32, i32, i32) {
    %c0_i32 = arith.constant 0 : i32
    %c0_i32_0 = arith.constant 0 : i32
    %c0_i32_1 = arith.constant 0 : i32
    %c0_i32_2 = arith.constant 0 : i32
    %c0_i32_3 = arith.constant 0 : i32
    return %c0_i32, %c0_i32_0, %c0_i32_1, %c0_i32_2 : i32, i32, i32, i32
  }
  func.func @transform_3(%arg0: i32) -> (i32, i32, i32, i32) {
    %c0_i32 = arith.constant 0 : i32
    %c0_i32_0 = arith.constant 0 : i32
    %c0_i32_1 = arith.constant 0 : i32
    %c0_i32_2 = arith.constant 0 : i32
    %c0_i32_3 = arith.constant 0 : i32
    return %c0_i32, %c0_i32_0, %c0_i32_1, %c0_i32_2 : i32, i32, i32, i32
  }
}

</mosaic_0001>

<bundles_post_ra>
// kernel: tpu_custom_call.1
= control target key start
LH: loop header
LB: loop body
LE: loop exit
PB: predicated region body
PF: predicated region fallthrough
CT: control target
= control target key end

     0   :  { %8 = vsyncpa [#allocation3], 0  ;;  %s7077_s0 = inlined_call_operand.hbm [shape: f32[4,4,16,16], index: 0, kind: input, shape index: {}]   ;;  %s7078_s1 = inlined_call_operand.hbm [shape: f32[4,4,16,16], index: 1, kind: input, shape index: {}]   ;;  %s7079_s2 = inlined_call_operand.hbm [shape: f32[2,4,16,16], index: 2, kind: input, shape index: {}]   ;;  %s7080_s3 = inlined_call_operand.hbm [shape: f32[2,4,16,16], index: 3, kind: output, shape index: {}]  }
   0x1   :  { %9 = vsyncpa [#allocation6], 0 }
   0x2   :  { %10 = vsyncpa [#allocation4], 0  ;;  %s6467_s12 = smov [#allocation5]   ;;  %s6468_s14 = smov [#allocation2]  }
   0x3   :  { %s28_s13 = sshll.u32 %s6467_s12, 4  ;;  %s16_s15 = sshll.u32 %s6468_s14, 4  ;;  %s29_s13 = int_to_ptr.vmem [resolvable:$true] %s28_s13  ;;  %s17_s15 = int_to_ptr.vmem [resolvable:$true] %s16_s15 }
   0x4   :  { %s6389_s16 = scalar_lea.vmem %s29_s13, 4096  ;;  %p6394_p1 = scmp.lt.s32.totalorder %s29_s13, %s29_s13 }
   0x5   :  { %p6390_p0 = scmp.ne.s32.totalorder %s29_s13, %s6389_s16  ;;  %p6395_p2 = scmp.lt.s32.totalorder %s6389_s16, %s6389_s16 }
   0x7   :  { %p6396_p3 = por %p6395_p2, %p6394_p1 }
   0x9   :  { %p6397_p4 = pnand %p6396_p3, %p6390_p0 }
   0xb   :  { %6400 = shalt.err (!%p6397_p4)
}
   0xc   :  { %s6469_s17 = smov 128   ;;  %s6470_s18 = smov 8  }
   0xd   :  { %34 = dma.hbm_to_vmem [thread:$0]  %s7078_s1, 4096, %s29_s13, [#allocation6], %s6469_s17, %s6469_s17, %s6470_s18  }
   0xe   :  { %s6409_s21 = scalar_lea.vmem %s17_s15, 4096  ;;  %p6414_p6 = scmp.lt.s32.totalorder %s17_s15, %s17_s15 }
   0xf   :  { %p6410_p5 = scmp.ne.s32.totalorder %s17_s15, %s6409_s21  ;;  %p6415_p7 = scmp.lt.s32.totalorder %s6409_s21, %s6409_s21 }
  0x11   :  { %p6416_p8 = por %p6415_p7, %p6414_p6 }
  0x13   :  { %p6417_p9 = pnand %p6416_p8, %p6410_p5 }
  0x15   :  { %6420 = shalt.err (!%p6417_p9)
}
  0x16   :  { %22 = dma.hbm_to_vmem [thread:$0]  %s7077_s0, 4096, %s17_s15, [#allocation3], %s6469_s17, %s6469_s17, %s6470_s18  }
  0x17   :  { %s6471_s24 = smov [#allocation7]  }
  0x18   :  { %s40_s25 = sshll.u32 %s6471_s24, 4  ;;  %s41_s25 = int_to_ptr.vmem [resolvable:$true] %s40_s25 }
  0x19   :  { %s6429_s26 = scalar_lea.vmem %s41_s25, 2048  ;;  %p6434_p11 = scmp.lt.s32.totalorder %s41_s25, %s41_s25 }
  0x1a   :  { %p6430_p10 = scmp.ne.s32.totalorder %s41_s25, %s6429_s26  ;;  %p6435_p12 = scmp.lt.s32.totalorder %s6429_s26, %s6429_s26 }
  0x1c   :  { %p6436_p13 = por %p6435_p12, %p6434_p11 }
  0x1e   :  { %p6437_p0 = pnand %p6436_p13, %p6430_p10 }
  0x20   :  { %6440 = shalt.err (!%p6437_p0)
}
  0x21   :  { %46 = dma.hbm_to_vmem [thread:$0]  %s7079_s2, 2048, %s41_s25, [#allocation6], %s6469_s17, %s6469_s17, %s6470_s18  }
  0x22   :  { %6461 = dma.done.wait [#allocation3], 4096  }
  0x23   :  { %6462 = vsyncadd [#allocation3], 4294963200 }
  0x24   :  { %6463 = dma.done.wait [#allocation6], 6144  }
  0x25   :  { %6464 = vsyncadd [#allocation6], 4294961152  ;;  %v6511_v0 = vld [vmem:[#allocation5 + $0x8] sm:$0xff]  ;;  %v6513_v1 = vld [vmem:[#allocation5 + $0x18] sm:$0xff]  ;;  %vm60_vm0 = vcmask 130048   ;;  %s6472_s0 = smov [#allocation8]  }
  0x26   :  { %v6515_v2 = vld [vmem:[#allocation5] sm:$0xff]  ;;  %5927 = vmatprep.subr.mxu0 %v6511_v0  ;;  %5934 = vmatprep.subr.mxu1 %v6513_v1  ;;  %v6519_v3 = vld [vmem:[#allocation5 + $0x10] sm:$0xff]  ;;  %v6529_v6 = vld [vmem:[#allocation7 + $0x8] sm:$0xff]  ;;  %s5530_s2 = sshll.u32 %s6472_s0, 4  ;;  %s5531_s2 = int_to_ptr.vmem [resolvable:$true] %s5530_s2 }
  0x27   :  { %v6521_v4 = vld [vmem:[#allocation7] sm:$0xff]  ;;  %5928 = vmatpush3.msra.mxu0 %v6511_v0  ;;  %5935 = vmatpush3.msra.mxu1 %v6513_v1  ;;  %v6525_v5 = vld [vmem:[#allocation7 + $0x10] sm:$0xff]  ;;  %v6531_v7 = vld [vmem:[#allocation7 + $0x18] sm:$0xff]  ;;  %s6441_s28 = scalar_lea.vmem %s5531_s2, 2048  ;;  %p6446_p2 = scmp.lt.s32.totalorder %s5531_s2, %s5531_s2 }
  0x28   :  { %5929 = vmatprep.subr.mxu0 %v6515_v2  ;;  %5936 = vmatprep.subr.mxu1 %v6519_v3  ;;  %v6543_v8 = vld [vmem:[#allocation2 + $0x10] sm:$0xff]  ;;  %v6545_v9 = vld [vmem:[#allocation2] sm:$0xff]  ;;  %v6551_v14 = vld [vmem:[#allocation2 + $0x18] sm:$0xff]  ;;  %p6442_p1 = scmp.ne.s32.totalorder %s5531_s2, %s6441_s28  ;;  %p6447_p3 = scmp.lt.s32.totalorder %s6441_s28, %s6441_s28 }
  0x29   :  { %5930 = vmatpush3.msra.mxu0 %v6515_v2  ;;  %5931 = vmatprep.mubr.msk.f32.mxu0 %vm60_vm0, %v6521_v4  ;;  %v6553_v15 = vld [vmem:[#allocation2 + $0x8] sm:$0xff]  ;;  %v6557_v17 = vld [vmem:[#allocation7 + $0x20] sm:$0xff]  ;;  %v6571_v20 = vld [vmem:[#allocation5 + $0x38] sm:$0xff] }
  0x2a   :  { %5937 = vmatpush3.msra.mxu1 %v6519_v3  ;;  %5938 = vmatprep.mubr.msk.f32.mxu1 %vm60_vm0, %v6525_v5  ;;  %v6555_v16 = vld [vmem:[#allocation5 + $0x28] sm:$0xff]  ;;  %v6563_v18 = vld [vmem:[#allocation5 + $0x20] sm:$0xff]  ;;  %v6574_v21 = vld [vmem:[#allocation7 + $0x30] sm:$0xff]  ;;  %p6448_p4 = por %p6447_p3, %p6446_p2 }
  0x2b   :  { %5932 = vmatmul.mubr.msk.f32.vlgmr.msra.gmra.mxu0 %vm60_vm0, %v6529_v6  ;;  %5939 = vmatmul.mubr.msk.f32.vlgmr.msra.gmra.mxu1 %vm60_vm0, %v6531_v7  ;;  %v6569_v19 = vld [vmem:[#allocation7 + $0x28] sm:$0xff]  ;;  %v6577_v22 = vld [vmem:[#allocation5 + $0x30] sm:$0xff]  ;;  %v6585_v23 = vld [vmem:[#allocation7 + $0x38] sm:$0xff] }
  0x2c   :  { %5945 = vmatprep.mubr.msk.f32.mxu0 %vm60_vm0, %v6543_v8  ;;  %5952 = vmatprep.mubr.msk.f32.mxu1 %vm60_vm0, %v6545_v9  ;;  %v6593_v24 = vld [vmem:[#allocation2 + $0x20] sm:$0xff]  ;;  %v6597_v25 = vld [vmem:[#allocation5 + $0x48] sm:$0xff]  ;;  %v6609_v32 = vld [vmem:[#allocation2 + $0x30] sm:$0xff]  ;;  %p6449_p5 = pnand %p6448_p4, %p6442_p1 }
  0x2d   :  { %v6601_v26 = vld [vmem:[#allocation5 + $0x40] sm:$0xff]  ;;  %v6607_v31 = vld [vmem:[#allocation2 + $0x28] sm:$0xff]  ;;  %v6615_v35 = vld [vmem:[#allocation2 + $0x38] sm:$0xff] }
  0x2e   :  { %v6617_v36 = vld [vmem:[#allocation5 + $0x58] sm:$0xff]  ;;  %v6619_v37 = vld [vmem:[#allocation5 + $0x50] sm:$0xff]  ;;  %v6633_v41 = vld [vmem:[#allocation2 + $0x40] sm:$0xff] }
  0x2f   :  { %v6631_v40 = vld [vmem:[#allocation2 + $0x50] sm:$0xff]  ;;  %v6637_v42 = vld [vmem:[#allocation2 + $0x48] sm:$0xff]  ;;  %v6645_v57 = vld [vmem:[#allocation2 + $0x58] sm:$0xff] }
  0x30   :  { %v6647_v58 = vld [vmem:[#allocation5 + $0x68] sm:$0xff]  ;;  %v6649_v59 = vld [vmem:[#allocation5 + $0x60] sm:$0xff]  ;;  %v6657_v60 = vld [vmem:[#allocation5 + $0x78] sm:$0xff] }
  0x31   :  { %v6661_v61 = vld [vmem:[#allocation5 + $0x70] sm:$0xff]  ;;  %v6675_v62 = vld [vmem:[#allocation2 + $0x60] sm:$0xff]  ;;  %v6679_v63 = vld [vmem:[#allocation5 + $0x88] sm:$0xff] }
  0xeb   :  { %v5933_v10 = vpop.f32.mrf.mxu0  ;;  %v5940_v11 = vpop.f32.mrf.mxu1 }
  0xec   :  { %5941 = vmatprep.subr.mxu0 %v5940_v11  ;;  %5948 = vmatprep.subr.mxu1 %v5933_v10 }
  0xed   :  { %v133_v12 = vpop.f32.mrf.mxu0  ;;  %v222_v13 = vpop.f32.mrf.mxu1  ;;  %5942 = vmatpush3.msra.mxu0 %v5940_v11  ;;  %5949 = vmatpush3.msra.mxu1 %v5933_v10  ;;  %v6683_v10 = vld [vmem:[#allocation5 + $0x80] sm:$0xff] }
  0xee   :  { %5943 = vmatprep.subr.mxu0 %v222_v13  ;;  %5950 = vmatprep.subr.mxu1 %v133_v12 }
  0xef   :  { %5944 = vmatpush3.msra.mxu0 %v222_v13  ;;  %5951 = vmatpush3.msra.mxu1 %v133_v12 }
  0xf0   :  { %5946 = vmatmul.mubr.msk.f32.vlgmr.msra.gmra.mxu0 %vm60_vm0, %v6551_v14  ;;  %5953 = vmatmul.mubr.msk.f32.vlgmr.msra.gmra.mxu1 %vm60_vm0, %v6553_v15 }
  0xf1   :  { %5955 = vmatprep.subr.mxu0 %v6555_v16  ;;  %5959 = vmatprep.mubr.msk.f32.mxu0 %vm60_vm0, %v6557_v17 }
  0xf2   :  { %5956 = vmatpush3.msra.mxu0 %v6555_v16  ;;  %5966 = vmatprep.mubr.msk.f32.mxu1 %vm60_vm0, %v6593_v24 }
  0xf3   :  { %5957 = vmatprep.subr.mxu0 %v6563_v18 }
  0xf4   :  { %5958 = vmatpush3.msra.mxu0 %v6563_v18 }
  0xf5   :  { %5960 = vmatmul.mubr.msk.f32.vlgmr.msra.gmra.mxu0 %vm60_vm0, %v6569_v19  ;;  %5969 = vmatprep.subr.mxu0 %v6571_v20 }
  0xf6   :  { %5970 = vmatpush3.msra.mxu0 %v6571_v20  ;;  %5973 = vmatprep.mubr.msk.f32.mxu0 %vm60_vm0, %v6574_v21 }
  0xf7   :  { %5971 = vmatprep.subr.mxu0 %v6577_v22 }
  0xf8   :  { %5972 = vmatpush3.msra.mxu0 %v6577_v22 }
  0xf9   :  { %5974 = vmatmul.mubr.msk.f32.vlgmr.msra.gmra.mxu0 %vm60_vm0, %v6585_v23  ;;  %5983 = vmatprep.subr.mxu0 %v6597_v25 }
  0xfa   :  { %5987 = vmatprep.mubr.msk.f32.mxu0 %vm60_vm0, %v6521_v4  ;;  %5984 = vmatpush3.msra.mxu0 %v6597_v25 }
  0xfb   :  { %5985 = vmatprep.subr.mxu0 %v6601_v26 }
  0xfc   :  { %5986 = vmatpush3.msra.mxu0 %v6601_v26 }
  0xfd   :  { %5988 = vmatmul.mubr.msk.f32.vlgmr.msra.gmra.mxu0 %vm60_vm0, %v6529_v6 }
  0xfe   :  { %6001 = vmatprep.mubr.msk.f32.mxu0 %vm60_vm0, %v6631_v40 }
 0x1b0   :  { %v5947_v27 = vpop.f32.mrf.mxu0  ;;  %v5954_v43 = vpop.f32.mrf.mxu1 }
 0x1b1   :  { %v393_v46 = vadd.f32 %v5954_v43, %v5947_v27 }
 0x1b2   :  { %v306_v28 = vpop.f32.mrf.mxu0  ;;  %v387_v44 = vpop.f32.mrf.mxu1 }
 0x1b3   :  { %v388_v48 = vadd.f32 %v387_v44, %v306_v28  ;;  %v6689_v28 = vld [vmem:[#allocation2 + $0x68] sm:$0xff] }
 0x1b5   :  { %v5961_v29 = vpop.f32.mrf.mxu0 }
 0x1b6   :  { %5962 = vmatprep.subr.mxu1 %v5961_v29 }
 0x1b7   :  { %v474_v30 = vpop.f32.mrf.mxu0  ;;  %5963 = vmatpush3.msra.mxu1 %v5961_v29  ;;  %v6691_v29 = vld [vmem:[#allocation2 + $0x70] sm:$0xff] }
 0x1b8   :  { %5964 = vmatprep.subr.mxu1 %v474_v30 }
 0x1b9   :  { %5965 = vmatpush3.msra.mxu1 %v474_v30  ;;  %v5975_v33 = vpop.f32.mrf.mxu0 }
 0x1ba   :  { %5967 = vmatmul.mubr.msk.f32.vlgmr.msra.gmra.mxu1 %vm60_vm0, %v6607_v31  ;;  %5976 = vmatprep.subr.mxu1 %v5975_v33 }
 0x1bb   :  { %v647_v34 = vpop.f32.mrf.mxu0  ;;  %5977 = vmatpush3.msra.mxu1 %v5975_v33  ;;  %5980 = vmatprep.mubr.msk.f32.mxu1 %vm60_vm0, %v6609_v32 }
 0x1bc   :  { %5978 = vmatprep.subr.mxu1 %v647_v34 }
 0x1bd   :  { %5979 = vmatpush3.msra.mxu1 %v647_v34  ;;  %v5989_v38 = vpop.f32.mrf.mxu0  ;;  %v6697_v34 = vld [vmem:[#allocation2 + $0x78] sm:$0xff] }
 0x1be   :  { %5981 = vmatmul.mubr.msk.f32.vlgmr.msra.gmra.mxu1 %vm60_vm0, %v6615_v35  ;;  %5990 = vmatprep.subr.mxu1 %v6617_v36 }
 0x1bf   :  { %5991 = vmatpush3.msra.mxu1 %v6617_v36  ;;  %5994 = vmatprep.mubr.msk.f32.mxu1 %vm60_vm0, %v6525_v5  ;;  %v821_v39 = vpop.f32.mrf.mxu0 }
 0x1c0   :  { %5992 = vmatprep.subr.mxu1 %v6619_v37 }
 0x1c1   :  { %5993 = vmatpush3.msra.mxu1 %v6619_v37 }
 0x1c2   :  { %5995 = vmatmul.mubr.msk.f32.vlgmr.msra.gmra.mxu1 %vm60_vm0, %v6531_v7  ;;  %6004 = vmatprep.subr.mxu1 %v5989_v38 }
 0x1c3   :  { %6005 = vmatpush3.msra.mxu1 %v5989_v38  ;;  %6008 = vmatprep.mubr.msk.f32.mxu1 %vm60_vm0, %v6633_v41  ;;  %v6699_v38 = vld [vmem:[#allocation5 + $0x98] sm:$0xff] }
 0x1c4   :  { %6006 = vmatprep.subr.mxu1 %v821_v39 }
 0x1c5   :  { %6007 = vmatpush3.msra.mxu1 %v821_v39  ;;  %v6701_v39 = vld [vmem:[#allocation5 + $0x90] sm:$0xff] }
 0x1c6   :  { %6009 = vmatmul.mubr.msk.f32.vlgmr.msra.gmra.mxu1 %vm60_vm0, %v6637_v42 }
 0x1c7   :  { %6022 = vmatprep.mubr.msk.f32.mxu1 %vm60_vm0, %v6675_v62 }
 0x27a   :  { %v5968_v45 = vpop.f32.mrf.mxu1 }
 0x27b   :  { %v568_v49 = vadd.f32 %v5968_v45, %v393_v46  ;;  %v6713_v45 = vld [vmem:[#allocation2 + $0x90] sm:$0xff]  ;;  %v6715_v46 = vld [vmem:[#allocation2 + $0x80] sm:$0xff] }
 0x27c   :  { %v558_v47 = vpop.f32.mrf.mxu1 }
 0x27d   :  { %v567_v51 = vadd.f32 %v558_v47, %v388_v48  ;;  %v6719_v47 = vld [vmem:[#allocation2 + $0x88] sm:$0xff] }
 0x27e   :  { %v5982_v50 = vpop.f32.mrf.mxu1  ;;  %7100 = vst [vmem:[#allocation12_spill] sm:$0xff] %v6719_v47 }
 0x27f   :  { %v741_v52 = vadd.f32 %v5982_v50, %v568_v49 }
 0x280   :  { %v731_v53 = vpop.f32.mrf.mxu1 }
 0x281   :  { %743 = vst.msk [vmem:[#allocation8 + $0x8] sm:$0xff] %vm60_vm0, %v741_v52  ;;  %v740_v54 = vadd.f32 %v731_v53, %v567_v51 }
 0x282   :  { %v5996_v55 = vpop.f32.mrf.mxu1 }
 0x283   :  { %742 = vst.msk [vmem:[#allocation8] sm:$0xff] %vm60_vm0, %v740_v54  ;;  %5997 = vmatprep.subr.mxu0 %v5996_v55 }
 0x284   :  { %v910_v56 = vpop.f32.mrf.mxu1  ;;  %5998 = vmatpush3.msra.mxu0 %v5996_v55 }
 0x285   :  { %5999 = vmatprep.subr.mxu0 %v910_v56 }
 0x286   :  { %6000 = vmatpush3.msra.mxu0 %v910_v56  ;;  %v6010_v48 = vpop.f32.mrf.mxu1 }
 0x287   :  { %6002 = vmatmul.mubr.msk.f32.vlgmr.msra.gmra.mxu0 %vm60_vm0, %v6645_v57  ;;  %6011 = vmatprep.subr.mxu0 %v6647_v58 }
 0x288   :  { %6012 = vmatpush3.msra.mxu0 %v6647_v58  ;;  %6015 = vmatprep.mubr.msk.f32.mxu0 %vm60_vm0, %v6557_v17  ;;  %v1075_v49 = vpop.f32.mrf.mxu1 }
 0x289   :  { %6013 = vmatprep.subr.mxu0 %v6649_v59 }
 0x28a   :  { %6014 = vmatpush3.msra.mxu0 %v6649_v59 }
 0x28b   :  { %6016 = vmatmul.mubr.msk.f32.vlgmr.msra.gmra.mxu0 %vm60_vm0, %v6569_v19  ;;  %6025 = vmatprep.subr.mxu0 %v6657_v60 }
 0x28c   :  { %6026 = vmatpush3.msra.mxu0 %v6657_v60  ;;  %6029 = vmatprep.mubr.msk.f32.mxu0 %vm60_vm0, %v6574_v21 }
 0x28d   :  { %6027 = vmatprep.subr.mxu0 %v6661_v61 }
 0x28e   :  { %6028 = vmatpush3.msra.mxu0 %v6661_v61 }
 0x28f   :  { %6030 = vmatmul.mubr.msk.f32.vlgmr.msra.gmra.mxu0 %vm60_vm0, %v6585_v23  ;;  %6039 = vmatprep.subr.mxu0 %v6679_v63 }
 0x290   :  { %6043 = vmatprep.mubr.msk.f32.mxu0 %vm60_vm0, %v6521_v4  ;;  %6040 = vmatpush3.msra.mxu0 %v6679_v63 }
 0x291   :  { %6041 = vmatprep.subr.mxu0 %v6683_v10 }
 0x292   :  { %6042 = vmatpush3.msra.mxu0 %v6683_v10 }
 0x293   :  { %6044 = vmatmul.mubr.msk.f32.vlgmr.msra.gmra.mxu0 %vm60_vm0, %v6529_v6 }
 0x294   :  { %6057 = vmatprep.mubr.msk.f32.mxu0 %vm60_vm0, %v6713_v45 }
 0x347   :  { %v6003_v11 = vpop.f32.mrf.mxu0 }
 0x348   :  { %v1081_v51 = vadd.f32 %v6010_v48, %v6003_v11  ;;  %v6731_v11 = vld [vmem:[#allocation5 + $0xa0] sm:$0xff]  ;;  %v6743_v48 = vld [vmem:[#allocation5 + $0xb0] sm:$0xff] }
 0x349   :  { %v994_v12 = vpop.f32.mrf.mxu0  ;;  %7102 = vst [vmem:[#allocation14_spill] sm:$0xff] %v6743_v48 }
 0x34a   :  { %v1076_v53 = vadd.f32 %v1075_v49, %v994_v12  ;;  %v6739_v12 = vld [vmem:[#allocation5 + $0xb8] sm:$0xff]  ;;  %v6757_v49 = vld [vmem:[#allocation2 + $0xa0] sm:$0xff] }
 0x34b   :  { %v6017_v13 = vpop.f32.mrf.mxu0  ;;  %7101 = vst [vmem:[#allocation13_spill] sm:$0xff] %v6739_v12 }
 0x34c   :  { %6018 = vmatprep.subr.mxu1 %v6017_v13 }
 0x34d   :  { %v1161_v27 = vpop.f32.mrf.mxu0  ;;  %6019 = vmatpush3.msra.mxu1 %v6017_v13 }
 0x34e   :  { %6020 = vmatprep.subr.mxu1 %v1161_v27 }
 0x34f   :  { %6021 = vmatpush3.msra.mxu1 %v1161_v27  ;;  %v6031_v30 = vpop.f32.mrf.mxu0 }
 0x350   :  { %6023 = vmatmul.mubr.msk.f32.vlgmr.msra.gmra.mxu1 %vm60_vm0, %v6689_v28  ;;  %6032 = vmatprep.subr.mxu1 %v6031_v30 }
 0x351   :  { %v1333_v33 = vpop.f32.mrf.mxu0  ;;  %6033 = vmatpush3.msra.mxu1 %v6031_v30  ;;  %6036 = vmatprep.mubr.msk.f32.mxu1 %vm60_vm0, %v6691_v29 }
 0x352   :  { %6034 = vmatprep.subr.mxu1 %v1333_v33 }
 0x353   :  { %6035 = vmatpush3.msra.mxu1 %v1333_v33  ;;  %v6045_v43 = vpop.f32.mrf.mxu0 }
 0x354   :  { %6037 = vmatmul.mubr.msk.f32.vlgmr.msra.gmra.mxu1 %vm60_vm0, %v6697_v34  ;;  %6046 = vmatprep.subr.mxu1 %v6699_v38 }
 0x355   :  { %6047 = vmatpush3.msra.mxu1 %v6699_v38  ;;  %6050 = vmatprep.mubr.msk.f32.mxu1 %vm60_vm0, %v6525_v5  ;;  %v1508_v44 = vpop.f32.mrf.mxu0 }
 0x356   :  { %6048 = vmatprep.subr.mxu1 %v6701_v39 }
 0x357   :  { %6049 = vmatpush3.msra.mxu1 %v6701_v39 }
 0x358   :  { %6051 = vmatmul.mubr.msk.f32.vlgmr.msra.gmra.mxu1 %vm60_vm0, %v6531_v7  ;;  %6060 = vmatprep.subr.mxu1 %v6045_v43 }
 0x359   :  { %6061 = vmatpush3.msra.mxu1 %v6045_v43  ;;  %6064 = vmatprep.mubr.msk.f32.mxu1 %vm60_vm0, %v6715_v46 }
 0x35a   :  { %6062 = vmatprep.subr.mxu1 %v1508_v44 }
 0x35b   :  { %6063 = vmatpush3.msra.mxu1 %v1508_v44  ;;  %v6727_v44 = vld [vmem:[#allocation2 + $0x98] sm:$0xff] }
 0x35c   :  { %6065 = vmatmul.mubr.msk.f32.vlgmr.msra.gmra.mxu1 %vm60_vm0, %v6719_v47  ;;  %v6729_v47 = vld [vmem:[#allocation5 + $0xa8] sm:$0xff] }
 0x35d   :  { %6078 = vmatprep.mubr.msk.f32.mxu1 %vm60_vm0, %v6757_v49 }
 0x410   :  { %v6024_v50 = vpop.f32.mrf.mxu1 }
 0x411   :  { %v1255_v54 = vadd.f32 %v6024_v50, %v1081_v51  ;;  %v6761_v50 = vld [vmem:[#allocation5 + $0xc8] sm:$0xff]  ;;  %v6765_v51 = vld [vmem:[#allocation5 + $0xc0] sm:$0xff] }
 0x412   :  { %v1245_v52 = vpop.f32.mrf.mxu1  ;;  %7103 = vst [vmem:[#allocation15_spill] sm:$0xff] %v6761_v50  ;;  %7104 = vst [vmem:[#allocation16_spill] sm:$0xff] %v6765_v51 }
 0x413   :  { %v1254_v56 = vadd.f32 %v1245_v52, %v1076_v53 }
 0x414   :  { %v6038_v55 = vpop.f32.mrf.mxu1 }
 0x415   :  { %v1427_v13 = vadd.f32 %v6038_v55, %v1255_v54  ;;  %v6771_v55 = vld [vmem:[#allocation2 + $0xa8] sm:$0xff] }
 0x416   :  { %v1417_v27 = vpop.f32.mrf.mxu1  ;;  %7105 = vst [vmem:[#allocation17_spill] sm:$0xff] %v6771_v55 }
 0x417   :  { %1430 = vst.msk [vmem:[#allocation8 + $0x18] sm:$0xff] %vm60_vm0, %v1427_v13  ;;  %v1426_v30 = vadd.f32 %v1417_v27, %v1254_v56  ;;  %v6773_v56 = vld [vmem:[#allocation2 + $0xb0] sm:$0xff] }
 0x418   :  { %v6052_v33 = vpop.f32.mrf.mxu1  ;;  %7106 = vst [vmem:[#allocation18_spill] sm:$0xff] %v6773_v56 }
 0x419   :  { %1429 = vst.msk [vmem:[#allocation8 + $0x10] sm:$0xff] %vm60_vm0, %v1426_v30  ;;  %6053 = vmatprep.subr.mxu0 %v6052_v33  ;;  %v6781_v30 = vld [vmem:[#allocation5 + $0xd8] sm:$0xff] }
 0x41a   :  { %v1597_v43 = vpop.f32.mrf.mxu1  ;;  %6054 = vmatpush3.msra.mxu0 %v6052_v33  ;;  %7108 = vst [vmem:[#allocation20_spill] sm:$0xff] %v6781_v30  ;;  %v6783_v33 = vld [vmem:[#allocation5 + $0xd0] sm:$0xff] }
 0x41b   :  { %6055 = vmatprep.subr.mxu0 %v1597_v43  ;;  %7109 = vst [vmem:[#allocation21_spill] sm:$0xff] %v6783_v33 }
 0x41c   :  { %6056 = vmatpush3.msra.mxu0 %v1597_v43 }
 0x41d   :  { %6058 = vmatmul.mubr.msk.f32.vlgmr.msra.gmra.mxu0 %vm60_vm0, %v6727_v44  ;;  %6067 = vmatprep.subr.mxu0 %v6729_v47 }
 0x41e   :  { %6068 = vmatpush3.msra.mxu0 %v6729_v47  ;;  %6071 = vmatprep.mubr.msk.f32.mxu0 %vm60_vm0, %v6557_v17 }
 0x41f   :  { %6069 = vmatprep.subr.mxu0 %v6731_v11 }
 0x420   :  { %6070 = vmatpush3.msra.mxu0 %v6731_v11 }
 0x421   :  { %6072 = vmatmul.mubr.msk.f32.vlgmr.msra.gmra.mxu0 %vm60_vm0, %v6569_v19  ;;  %6081 = vmatprep.subr.mxu0 %v6739_v12 }
 0x422   :  { %6082 = vmatpush3.msra.mxu0 %v6739_v12  ;;  %6085 = vmatprep.mubr.msk.f32.mxu0 %vm60_vm0, %v6574_v21  ;;  %v6811_v12 = vld [vmem:[#allocation5 + $0xe8] sm:$0xff] }
 0x423   :  { %6083 = vmatprep.subr.mxu0 %v6743_v48 }
 0x424   :  { %6084 = vmatpush3.msra.mxu0 %v6743_v48 }
 0x425   :  { %6086 = vmatmul.mubr.msk.f32.vlgmr.msra.gmra.mxu0 %vm60_vm0, %v6585_v23  ;;  %6095 = vmatprep.subr.mxu0 %v6761_v50 }
 0x426   :  { %6099 = vmatprep.mubr.msk.f32.mxu0 %vm60_vm0, %v6521_v4  ;;  %6096 = vmatpush3.msra.mxu0 %v6761_v50 }
 0x427   :  { %6097 = vmatprep.subr.mxu0 %v6765_v51 }
 0x428   :  { %6098 = vmatpush3.msra.mxu0 %v6765_v51 }
 0x429   :  { %6100 = vmatmul.mubr.msk.f32.vlgmr.msra.gmra.mxu0 %vm60_vm0, %v6529_v6  ;;  %v6779_v6 = vld [vmem:[#allocation2 + $0xb8] sm:$0xff] }
 0x42a   :  { %7107 = vst [vmem:[#allocation19_spill] sm:$0xff] %v6779_v6 }
 0x4dd   :  { %v6059_v4 = vpop.f32.mrf.mxu0 }
 0x4df   :  { %v1681_v52 = vpop.f32.mrf.mxu0 }
 0x4e1   :  { %v6073_v53 = vpop.f32.mrf.mxu0 }
 0x4e2   :  { %6074 = vmatprep.subr.mxu1 %v6073_v53 }
 0x4e3   :  { %v1848_v54 = vpop.f32.mrf.mxu0  ;;  %6075 = vmatpush3.msra.mxu1 %v6073_v53 }
 0x4e4   :  { %6076 = vmatprep.subr.mxu1 %v1848_v54 }
 0x4e5   :  { %6077 = vmatpush3.msra.mxu1 %v1848_v54  ;;  %v6087_v13 = vpop.f32.mrf.mxu0  ;;  %v6795_v54 = vld [vmem:[#allocation2 + $0xd0] sm:$0xff] }
 0x4e6   :  { %6079 = vmatmul.mubr.msk.f32.vlgmr.msra.gmra.mxu1 %vm60_vm0, %v6771_v55  ;;  %6088 = vmatprep.subr.mxu1 %v6087_v13  ;;  %7110 = vst [vmem:[#allocation22_spill] sm:$0xff] %v6795_v54 }
 0x4e7   :  { %v2020_v27 = vpop.f32.mrf.mxu0  ;;  %6089 = vmatpush3.msra.mxu1 %v6087_v13  ;;  %6092 = vmatprep.mubr.msk.f32.mxu1 %vm60_vm0, %v6773_v56  ;;  %v6797_v13 = vld [vmem:[#allocation2 + $0xc0] sm:$0xff] }
 0x4e8   :  { %6090 = vmatprep.subr.mxu1 %v2020_v27  ;;  %7111 = vst [vmem:[#allocation23_spill] sm:$0xff] %v6797_v13  ;;  %6113 = vmatprep.mubr.msk.f32.mxu0 %vm60_vm0, %v6795_v54 }
 0x4e9   :  { %6091 = vmatpush3.msra.mxu1 %v2020_v27  ;;  %v6101_v43 = vpop.f32.mrf.mxu0 }
 0x4ea   :  { %6093 = vmatmul.mubr.msk.f32.vlgmr.msra.gmra.mxu1 %vm60_vm0, %v6779_v6  ;;  %6102 = vmatprep.subr.mxu1 %v6781_v30 }
 0x4eb   :  { %6103 = vmatpush3.msra.mxu1 %v6781_v30  ;;  %6106 = vmatprep.mubr.msk.f32.mxu1 %vm60_vm0, %v6525_v5  ;;  %v2195_v53 = vpop.f32.mrf.mxu0  ;;  %v6801_v5 = vld [vmem:[#allocation2 + $0xc8] sm:$0xff] }
 0x4ec   :  { %6104 = vmatprep.subr.mxu1 %v6783_v33  ;;  %7112 = vst [vmem:[#allocation24_spill] sm:$0xff] %v6801_v5 }
 0x4ed   :  { %6105 = vmatpush3.msra.mxu1 %v6783_v33 }
 0x4ee   :  { %6107 = vmatmul.mubr.msk.f32.vlgmr.msra.gmra.mxu1 %vm60_vm0, %v6531_v7  ;;  %6116 = vmatprep.subr.mxu1 %v6101_v43  ;;  %v6066_v7 = vpop.f32.mrf.mxu1 }
 0x4ef   :  { %6117 = vmatpush3.msra.mxu1 %v6101_v43  ;;  %6120 = vmatprep.mubr.msk.f32.mxu1 %vm60_vm0, %v6797_v13  ;;  %v1768_v33 = vadd.f32 %v6066_v7, %v6059_v4  ;;  %v6813_v4 = vld [vmem:[#allocation5 + $0xe0] sm:$0xff] }
 0x4f0   :  { %6118 = vmatprep.subr.mxu1 %v2195_v53  ;;  %v1762_v27 = vpop.f32.mrf.mxu1 }
 0x4f1   :  { %6119 = vmatpush3.msra.mxu1 %v2195_v53  ;;  %v1763_v6 = vadd.f32 %v1762_v27, %v1681_v52  ;;  %v6855_v52 = vld [vmem:[#allocation2 + $0xe8] sm:$0xff] }
 0x4f2   :  { %6121 = vmatmul.mubr.msk.f32.vlgmr.msra.gmra.mxu1 %vm60_vm0, %v6801_v5  ;;  %v6809_v5 = vld [vmem:[#allocation2 + $0xd8] sm:$0xff] }
 0x5a6   :  { %v6080_v43 = vpop.f32.mrf.mxu1 }
 0x5a7   :  { %v1942_v56 = vadd.f32 %v6080_v43, %v1768_v33  ;;  %v6873_v33 = vld [vmem:[#allocation7 + $0x58] sm:$0xff] }
 0x5a8   :  { %v1932_v30 = vpop.f32.mrf.mxu1 }
 0x5a9   :  { %v1941_v51 = vadd.f32 %v1932_v30, %v1763_v6  ;;  %v6865_v30 = vld [vmem:[#allocation7 + $0x50] sm:$0xff] }
 0x5aa   :  { %v6094_v55 = vpop.f32.mrf.mxu1 }
 0x5ab   :  { %v2114_v50 = vadd.f32 %v6094_v55, %v1942_v56  ;;  %v6857_v55 = vld [vmem:[#allocation2 + $0xf0] sm:$0xff] }
 0x5ac   :  { %v2104_v54 = vpop.f32.mrf.mxu1 }
 0x5ad   :  { %2117 = vst.msk [vmem:[#allocation8 + $0x28] sm:$0xff] %vm60_vm0, %v2114_v50  ;;  %v2113_v53 = vadd.f32 %v2104_v54, %v1941_v51  ;;  %v6821_v50 = vld [vmem:[#allocation5 + $0xf8] sm:$0xff] }
 0x5ae   :  { %v6108_v48 = vpop.f32.mrf.mxu1 }
 0x5af   :  { %2116 = vst.msk [vmem:[#allocation8 + $0x20] sm:$0xff] %vm60_vm0, %v2113_v53  ;;  %6109 = vmatprep.subr.mxu0 %v6108_v48 }
 0x5b0   :  { %v2284_v13 = vpop.f32.mrf.mxu1  ;;  %6110 = vmatpush3.msra.mxu0 %v6108_v48  ;;  %v6825_v48 = vld [vmem:[#allocation5 + $0xf0] sm:$0xff] }
 0x5b1   :  { %6111 = vmatprep.subr.mxu0 %v2284_v13 }
 0x5b2   :  { %6112 = vmatpush3.msra.mxu0 %v2284_v13 }
 0x5b3   :  { %6114 = vmatmul.mubr.msk.f32.vlgmr.msra.gmra.mxu0 %vm60_vm0, %v6809_v5  ;;  %6123 = vmatprep.subr.mxu0 %v6811_v12 }
 0x5b4   :  { %6124 = vmatpush3.msra.mxu0 %v6811_v12  ;;  %6127 = vmatprep.mubr.msk.f32.mxu0 %vm60_vm0, %v6557_v17  ;;  %v6841_v17 = vld [vmem:[#allocation2 + $0xe0] sm:$0xff] }
 0x5b5   :  { %6125 = vmatprep.subr.mxu0 %v6813_v4  ;;  %6134 = vmatprep.mubr.msk.f32.mxu1 %vm60_vm0, %v6841_v17 }
 0x5b6   :  { %6126 = vmatpush3.msra.mxu0 %v6813_v4 }
 0x5b7   :  { %6128 = vmatmul.mubr.msk.f32.vlgmr.msra.gmra.mxu0 %vm60_vm0, %v6569_v19  ;;  %6137 = vmatprep.subr.mxu0 %v6821_v50  ;;  %v6845_v19 = vld [vmem:[#allocation7 + $0x40] sm:$0xff] }
 0x5b8   :  { %6138 = vmatpush3.msra.mxu0 %v6821_v50  ;;  %6141 = vmatprep.mubr.msk.f32.mxu0 %vm60_vm0, %v6574_v21  ;;  %v6849_v21 = vld [vmem:[#allocation7 + $0x48] sm:$0xff] }
 0x5b9   :  { %6139 = vmatprep.subr.mxu0 %v6825_v48 }
 0x5ba   :  { %6140 = vmatpush3.msra.mxu0 %v6825_v48 }
 0x5bb   :  { %6142 = vmatmul.mubr.msk.f32.vlgmr.msra.gmra.mxu0 %vm60_vm0, %v6585_v23  ;;  %6151 = vmatprep.subr.mxu0 %v6511_v0 }
 0x5bc   :  { %6152 = vmatpush3.msra.mxu0 %v6511_v0  ;;  %6155 = vmatprep.mubr.msk.f32.mxu0 %vm60_vm0, %v6845_v19 }
 0x5bd   :  { %6153 = vmatprep.subr.mxu0 %v6515_v2 }
 0x5be   :  { %6154 = vmatpush3.msra.mxu0 %v6515_v2 }
 0x5bf   :  { %6156 = vmatmul.mubr.msk.f32.vlgmr.msra.gmra.mxu0 %vm60_vm0, %v6849_v21 }
 0x5c0   :  { %6169 = vmatprep.mubr.msk.f32.mxu0 %vm60_vm0, %v6543_v8  ;;  %v6863_v8 = vld [vmem:[#allocation2 + $0xf8] sm:$0xff] }
 0x673   :  { %v6115_v0 = vpop.f32.mrf.mxu0 }
 0x675   :  { %v2368_v2 = vpop.f32.mrf.mxu0 }
 0x677   :  { %v6129_v23 = vpop.f32.mrf.mxu0 }
 0x678   :  { %6130 = vmatprep.subr.mxu1 %v6129_v23 }
 0x679   :  { %v2535_v51 = vpop.f32.mrf.mxu0  ;;  %6131 = vmatpush3.msra.mxu1 %v6129_v23 }
 0x67a   :  { %6132 = vmatprep.subr.mxu1 %v2535_v51 }
 0x67b   :  { %6133 = vmatpush3.msra.mxu1 %v2535_v51  ;;  %v6143_v56 = vpop.f32.mrf.mxu0 }
 0x67c   :  { %6135 = vmatmul.mubr.msk.f32.vlgmr.msra.gmra.mxu1 %vm60_vm0, %v6855_v52  ;;  %6144 = vmatprep.subr.mxu1 %v6143_v56 }
 0x67d   :  { %v2707_v6 = vpop.f32.mrf.mxu0  ;;  %6145 = vmatpush3.msra.mxu1 %v6143_v56  ;;  %6148 = vmatprep.mubr.msk.f32.mxu1 %vm60_vm0, %v6857_v55 }
 0x67e   :  { %6146 = vmatprep.subr.mxu1 %v2707_v6 }
 0x67f   :  { %6147 = vmatpush3.msra.mxu1 %v2707_v6  ;;  %v6157_v54 = vpop.f32.mrf.mxu0 }
 0x680   :  { %6149 = vmatmul.mubr.msk.f32.vlgmr.msra.gmra.mxu1 %vm60_vm0, %v6863_v8  ;;  %6158 = vmatprep.subr.mxu1 %v6513_v1 }
 0x681   :  { %6159 = vmatpush3.msra.mxu1 %v6513_v1  ;;  %6162 = vmatprep.mubr.msk.f32.mxu1 %vm60_vm0, %v6865_v30  ;;  %v2882_v13 = vpop.f32.mrf.mxu0  ;;  %v6122_v1 = vpop.f32.mrf.mxu1 }
 0x682   :  { %6160 = vmatprep.subr.mxu1 %v6519_v3  ;;  %v2455_v27 = vadd.f32 %v6122_v1, %v6115_v0  ;;  %v6895_v0 = vld [vmem:[#allocation7 + $0x68] sm:$0xff] }
 0x683   :  { %6161 = vmatpush3.msra.mxu1 %v6519_v3  ;;  %v2449_v3 = vpop.f32.mrf.mxu1 }
 0x684   :  { %6163 = vmatmul.mubr.msk.f32.vlgmr.msra.gmra.mxu1 %vm60_vm0, %v6873_v33  ;;  %6172 = vmatprep.subr.mxu1 %v6157_v54  ;;  %v2450_v53 = vadd.f32 %v2449_v3, %v2368_v2  ;;  %v6898_v2 = vld [vmem:[#allocation7 + $0x70] sm:$0xff] }
 0x685   :  { %6176 = vmatprep.mubr.msk.f32.mxu1 %vm60_vm0, %v6545_v9  ;;  %6173 = vmatpush3.msra.mxu1 %v6157_v54 }
 0x686   :  { %6174 = vmatprep.subr.mxu1 %v2882_v13 }
 0x687   :  { %6175 = vmatpush3.msra.mxu1 %v2882_v13 }
 0x688   :  { %6177 = vmatmul.mubr.msk.f32.vlgmr.msra.gmra.mxu1 %vm60_vm0, %v6553_v15 }
 0x689   :  { %6190 = vmatprep.mubr.msk.f32.mxu1 %vm60_vm0, %v6593_v24  ;;  %v6887_v24 = vld [vmem:[#allocation7 + $0x60] sm:$0xff] }
 0x73c   :  { %v6136_v7 = vpop.f32.mrf.mxu1 }
 0x73d   :  { %v2629_v23 = vadd.f32 %v6136_v7, %v2455_v27 }
 0x73e   :  { %v2619_v43 = vpop.f32.mrf.mxu1 }
 0x73f   :  { %v2628_v51 = vadd.f32 %v2619_v43, %v2450_v53 }
 0x740   :  { %v6150_v9 = vpop.f32.mrf.mxu1 }
 0x741   :  { %v2801_v56 = vadd.f32 %v6150_v9, %v2629_v23 }
 0x742   :  { %v2791_v6 = vpop.f32.mrf.mxu1 }
 0x743   :  { %2804 = vst.msk [vmem:[#allocation8 + $0x38] sm:$0xff] %vm60_vm0, %v2801_v56  ;;  %v2800_v54 = vadd.f32 %v2791_v6, %v2628_v51 }
 0x744   :  { %v6164_v13 = vpop.f32.mrf.mxu1 }
 0x745   :  { %2803 = vst.msk [vmem:[#allocation8 + $0x30] sm:$0xff] %vm60_vm0, %v2800_v54  ;;  %6165 = vmatprep.subr.mxu0 %v6164_v13 }
 0x746   :  { %v2970_v15 = vpop.f32.mrf.mxu1  ;;  %6166 = vmatpush3.msra.mxu0 %v6164_v13 }
 0x747   :  { %6167 = vmatprep.subr.mxu0 %v2970_v15 }
 0x748   :  { %6168 = vmatpush3.msra.mxu0 %v2970_v15 }
 0x749   :  { %6170 = vmatmul.mubr.msk.f32.vlgmr.msra.gmra.mxu0 %vm60_vm0, %v6551_v14  ;;  %6179 = vmatprep.subr.mxu0 %v6555_v16  ;;  %v6907_v14 = vld [vmem:[#allocation7 + $0x78] sm:$0xff] }
 0x74a   :  { %6180 = vmatpush3.msra.mxu0 %v6555_v16  ;;  %6183 = vmatprep.mubr.msk.f32.mxu0 %vm60_vm0, %v6887_v24 }
 0x74b   :  { %6181 = vmatprep.subr.mxu0 %v6563_v18 }
 0x74c   :  { %6182 = vmatpush3.msra.mxu0 %v6563_v18 }
 0x74d   :  { %6184 = vmatmul.mubr.msk.f32.vlgmr.msra.gmra.mxu0 %vm60_vm0, %v6895_v0  ;;  %6193 = vmatprep.subr.mxu0 %v6571_v20 }
 0x74e   :  { %6194 = vmatpush3.msra.mxu0 %v6571_v20  ;;  %6197 = vmatprep.mubr.msk.f32.mxu0 %vm60_vm0, %v6898_v2 }
 0x74f   :  { %6195 = vmatprep.subr.mxu0 %v6577_v22 }
 0x750   :  { %6196 = vmatpush3.msra.mxu0 %v6577_v22 }
 0x751   :  { %6198 = vmatmul.mubr.msk.f32.vlgmr.msra.gmra.mxu0 %vm60_vm0, %v6907_v14  ;;  %6207 = vmatprep.subr.mxu0 %v6597_v25 }
 0x752   :  { %6208 = vmatpush3.msra.mxu0 %v6597_v25  ;;  %6211 = vmatprep.mubr.msk.f32.mxu0 %vm60_vm0, %v6845_v19 }
 0x753   :  { %6209 = vmatprep.subr.mxu0 %v6601_v26 }
 0x754   :  { %6210 = vmatpush3.msra.mxu0 %v6601_v26 }
 0x755   :  { %6212 = vmatmul.mubr.msk.f32.vlgmr.msra.gmra.mxu0 %vm60_vm0, %v6849_v21 }
 0x756   :  { %6225 = vmatprep.mubr.msk.f32.mxu0 %vm60_vm0, %v6631_v40 }
 0x809   :  { %v6171_v16 = vpop.f32.mrf.mxu0 }
 0x80b   :  { %v3053_v18 = vpop.f32.mrf.mxu0 }
 0x80d   :  { %v6185_v20 = vpop.f32.mrf.mxu0 }
 0x80e   :  { %6186 = vmatprep.subr.mxu1 %v6185_v20 }
 0x80f   :  { %v3220_v22 = vpop.f32.mrf.mxu0  ;;  %6187 = vmatpush3.msra.mxu1 %v6185_v20  ;;  %v7118_v20 = vld [vmem:[#allocation22_spill] sm:$0xff] }
 0x810   :  { %6188 = vmatprep.subr.mxu1 %v3220_v22 }
 0x811   :  { %6189 = vmatpush3.msra.mxu1 %v3220_v22  ;;  %v6199_v25 = vpop.f32.mrf.mxu0 }
 0x812   :  { %6191 = vmatmul.mubr.msk.f32.vlgmr.msra.gmra.mxu1 %vm60_vm0, %v6607_v31  ;;  %6200 = vmatprep.subr.mxu1 %v6199_v25 }
 0x813   :  { %v3391_v26 = vpop.f32.mrf.mxu0  ;;  %6201 = vmatpush3.msra.mxu1 %v6199_v25  ;;  %6204 = vmatprep.mubr.msk.f32.mxu1 %vm60_vm0, %v6609_v32 }
 0x814   :  { %6202 = vmatprep.subr.mxu1 %v3391_v26 }
 0x815   :  { %6203 = vmatpush3.msra.mxu1 %v3391_v26  ;;  %v6213_v31 = vpop.f32.mrf.mxu0 }
 0x816   :  { %6205 = vmatmul.mubr.msk.f32.vlgmr.msra.gmra.mxu1 %vm60_vm0, %v6615_v35  ;;  %6214 = vmatprep.subr.mxu1 %v6617_v36  ;;  %v6178_v35 = vpop.f32.mrf.mxu1 }
 0x817   :  { %6215 = vmatpush3.msra.mxu1 %v6617_v36  ;;  %6218 = vmatprep.mubr.msk.f32.mxu1 %vm60_vm0, %v6865_v30  ;;  %v3564_v32 = vpop.f32.mrf.mxu0  ;;  %v3140_v40 = vadd.f32 %v6178_v35, %v6171_v16 }
 0x818   :  { %6216 = vmatprep.subr.mxu1 %v6619_v37  ;;  %v3134_v36 = vpop.f32.mrf.mxu1 }
 0x819   :  { %6217 = vmatpush3.msra.mxu1 %v6619_v37  ;;  %v3135_v3 = vadd.f32 %v3134_v36, %v3053_v18  ;;  %v7120_v36 = vld [vmem:[#allocation18_spill] sm:$0xff] }
 0x81a   :  { %6219 = vmatmul.mubr.msk.f32.vlgmr.msra.gmra.mxu1 %vm60_vm0, %v6873_v33  ;;  %6228 = vmatprep.subr.mxu1 %v6213_v31 }
 0x81b   :  { %6232 = vmatprep.mubr.msk.f32.mxu1 %vm60_vm0, %v6633_v41  ;;  %6229 = vmatpush3.msra.mxu1 %v6213_v31 }
 0x81c   :  { %6230 = vmatprep.subr.mxu1 %v3564_v32 }
 0x81d   :  { %6231 = vmatpush3.msra.mxu1 %v3564_v32 }
 0x81e   :  { %6233 = vmatmul.mubr.msk.f32.vlgmr.msra.gmra.mxu1 %vm60_vm0, %v6637_v42 }
 0x81f   :  { %6246 = vmatprep.mubr.msk.f32.mxu1 %vm60_vm0, %v6675_v62 }
 0x8d2   :  { %v6192_v37 = vpop.f32.mrf.mxu1 }
 0x8d3   :  { %v3313_v7 = vadd.f32 %v6192_v37, %v3140_v40  ;;  %v7122_v37 = vld [vmem:[#allocation20_spill] sm:$0xff]  ;;  %v7123_v40 = vld [vmem:[#allocation21_spill] sm:$0xff] }
 0x8d4   :  { %v3303_v1 = vpop.f32.mrf.mxu1 }
 0x8d5   :  { %v3312_v27 = vadd.f32 %v3303_v1, %v3135_v3  ;;  %v7124_v1 = vld [vmem:[#allocation23_spill] sm:$0xff] }
 0x8d6   :  { %v6206_v41 = vpop.f32.mrf.mxu1 }
 0x8d7   :  { %v3484_v43 = vadd.f32 %v6206_v41, %v3313_v7  ;;  %v7125_v41 = vld [vmem:[#allocation24_spill] sm:$0xff] }
 0x8d8   :  { %v3474_v53 = vpop.f32.mrf.mxu1 }
 0x8d9   :  { %3487 = vst.msk [vmem:[#allocation8 + $0x48] sm:$0xff] %vm60_vm0, %v3484_v43  ;;  %v3483_v23 = vadd.f32 %v3474_v53, %v3312_v27 }
 0x8da   :  { %v6220_v9 = vpop.f32.mrf.mxu1 }
 0x8db   :  { %3486 = vst.msk [vmem:[#allocation8 + $0x40] sm:$0xff] %vm60_vm0, %v3483_v23  ;;  %6221 = vmatprep.subr.mxu0 %v6220_v9 }
 0x8dc   :  { %v3651_v42 = vpop.f32.mrf.mxu1  ;;  %6222 = vmatpush3.msra.mxu0 %v6220_v9 }
 0x8dd   :  { %6223 = vmatprep.subr.mxu0 %v3651_v42 }
 0x8de   :  { %6224 = vmatpush3.msra.mxu0 %v3651_v42 }
 0x8df   :  { %6226 = vmatmul.mubr.msk.f32.vlgmr.msra.gmra.mxu0 %vm60_vm0, %v6645_v57  ;;  %6235 = vmatprep.subr.mxu0 %v6647_v58 }
 0x8e0   :  { %6236 = vmatpush3.msra.mxu0 %v6647_v58  ;;  %6239 = vmatprep.mubr.msk.f32.mxu0 %vm60_vm0, %v6887_v24 }
 0x8e1   :  { %6237 = vmatprep.subr.mxu0 %v6649_v59 }
 0x8e2   :  { %6238 = vmatpush3.msra.mxu0 %v6649_v59 }
 0x8e3   :  { %6240 = vmatmul.mubr.msk.f32.vlgmr.msra.gmra.mxu0 %vm60_vm0, %v6895_v0  ;;  %6249 = vmatprep.subr.mxu0 %v6657_v60 }
 0x8e4   :  { %6250 = vmatpush3.msra.mxu0 %v6657_v60  ;;  %6253 = vmatprep.mubr.msk.f32.mxu0 %vm60_vm0, %v6898_v2 }
 0x8e5   :  { %6251 = vmatprep.subr.mxu0 %v6661_v61 }
 0x8e6   :  { %6252 = vmatpush3.msra.mxu0 %v6661_v61 }
 0x8e7   :  { %6254 = vmatmul.mubr.msk.f32.vlgmr.msra.gmra.mxu0 %vm60_vm0, %v6907_v14  ;;  %6263 = vmatprep.subr.mxu0 %v6679_v63 }
 0x8e8   :  { %6264 = vmatpush3.msra.mxu0 %v6679_v63  ;;  %6267 = vmatprep.mubr.msk.f32.mxu0 %vm60_vm0, %v6845_v19 }
 0x8e9   :  { %6265 = vmatprep.subr.mxu0 %v6683_v10 }
 0x8ea   :  { %6266 = vmatpush3.msra.mxu0 %v6683_v10 }
 0x8eb   :  { %6268 = vmatmul.mubr.msk.f32.vlgmr.msra.gmra.mxu0 %vm60_vm0, %v6849_v21 }
 0x8ec   :  { %6281 = vmatprep.mubr.msk.f32.mxu0 %vm60_vm0, %v6713_v45 }
 0x99f   :  { %v6227_v57 = vpop.f32.mrf.mxu0 }
 0x9a1   :  { %v3734_v58 = vpop.f32.mrf.mxu0 }
 0x9a3   :  { %v6241_v59 = vpop.f32.mrf.mxu0 }
 0x9a4   :  { %6242 = vmatprep.subr.mxu1 %v6241_v59 }
 0x9a5   :  { %v3900_v60 = vpop.f32.mrf.mxu0  ;;  %6243 = vmatpush3.msra.mxu1 %v6241_v59 }
 0x9a6   :  { %6244 = vmatprep.subr.mxu1 %v3900_v60 }
 0x9a7   :  { %6245 = vmatpush3.msra.mxu1 %v3900_v60  ;;  %v6255_v61 = vpop.f32.mrf.mxu0 }
 0x9a8   :  { %6247 = vmatmul.mubr.msk.f32.vlgmr.msra.gmra.mxu1 %vm60_vm0, %v6689_v28  ;;  %6256 = vmatprep.subr.mxu1 %v6255_v61  ;;  %v7113_v28 = vld [vmem:[#allocation12_spill] sm:$0xff] }
 0x9a9   :  { %v4070_v62 = vpop.f32.mrf.mxu0  ;;  %6257 = vmatpush3.msra.mxu1 %v6255_v61  ;;  %6260 = vmatprep.mubr.msk.f32.mxu1 %vm60_vm0, %v6691_v29  ;;  %v6234_v29 = vpop.f32.mrf.mxu1 }
 0x9aa   :  { %6258 = vmatprep.subr.mxu1 %v4070_v62 }
 0x9ab   :  { %6259 = vmatpush3.msra.mxu1 %v4070_v62  ;;  %v6269_v63 = vpop.f32.mrf.mxu0 }
 0x9ac   :  { %6261 = vmatmul.mubr.msk.f32.vlgmr.msra.gmra.mxu1 %vm60_vm0, %v6697_v34  ;;  %6270 = vmatprep.subr.mxu1 %v6699_v38  ;;  %v3815_v34 = vpop.f32.mrf.mxu1 }
 0x9ad   :  { %6271 = vmatpush3.msra.mxu1 %v6699_v38  ;;  %6274 = vmatprep.mubr.msk.f32.mxu1 %vm60_vm0, %v6865_v30  ;;  %v4243_v10 = vpop.f32.mrf.mxu0  ;;  %v3816_v51 = vadd.f32 %v3815_v34, %v3734_v58 }
 0x9ae   :  { %6272 = vmatprep.subr.mxu1 %v6701_v39 }
 0x9af   :  { %6273 = vmatpush3.msra.mxu1 %v6701_v39  ;;  %v3821_v39 = vadd.f32 %v6234_v29, %v6227_v57 }
 0x9b0   :  { %6275 = vmatmul.mubr.msk.f32.vlgmr.msra.gmra.mxu1 %vm60_vm0, %v6873_v33  ;;  %6284 = vmatprep.subr.mxu1 %v6269_v63 }
 0x9b1   :  { %6288 = vmatprep.mubr.msk.f32.mxu1 %vm60_vm0, %v6715_v46  ;;  %6285 = vmatpush3.msra.mxu1 %v6269_v63 }
 0x9b2   :  { %6286 = vmatprep.subr.mxu1 %v4243_v10 }
 0x9b3   :  { %6287 = vmatpush3.msra.mxu1 %v4243_v10 }
 0x9b4   :  { %6289 = vmatmul.mubr.msk.f32.vlgmr.msra.gmra.mxu1 %vm60_vm0, %v7113_v28 }
 0x9b5   :  { %6302 = vmatprep.mubr.msk.f32.mxu1 %vm60_vm0, %v6757_v49  ;;  %v7114_v49 = vld [vmem:[#allocation13_spill] sm:$0xff] }
 0xa68   :  { %v6248_v38 = vpop.f32.mrf.mxu1 }
 0xa69   :  { %v3993_v56 = vadd.f32 %v6248_v38, %v3821_v39 }
 0xa6a   :  { %v3983_v45 = vpop.f32.mrf.mxu1 }
 0xa6b   :  { %v3992_v6 = vadd.f32 %v3983_v45, %v3816_v51 }
 0xa6c   :  { %v6262_v46 = vpop.f32.mrf.mxu1 }
 0xa6d   :  { %v4163_v54 = vadd.f32 %v6262_v46, %v3993_v56 }
 0xa6e   :  { %v4153_v13 = vpop.f32.mrf.mxu1 }
 0xa6f   :  { %4166 = vst.msk [vmem:[#allocation8 + $0x58] sm:$0xff] %vm60_vm0, %v4163_v54  ;;  %v4162_v15 = vadd.f32 %v4153_v13, %v3992_v6 }
 0xa70   :  { %v6276_v16 = vpop.f32.mrf.mxu1 }
 0xa71   :  { %4165 = vst.msk [vmem:[#allocation8 + $0x50] sm:$0xff] %vm60_vm0, %v4162_v15  ;;  %6277 = vmatprep.subr.mxu0 %v6276_v16 }
 0xa72   :  { %v4330_v18 = vpop.f32.mrf.mxu1  ;;  %6278 = vmatpush3.msra.mxu0 %v6276_v16 }
 0xa73   :  { %6279 = vmatprep.subr.mxu0 %v4330_v18 }
 0xa74   :  { %6280 = vmatpush3.msra.mxu0 %v4330_v18 }
 0xa75   :  { %6282 = vmatmul.mubr.msk.f32.vlgmr.msra.gmra.mxu0 %vm60_vm0, %v6727_v44  ;;  %6291 = vmatprep.subr.mxu0 %v6729_v47  ;;  %v7115_v44 = vld [vmem:[#allocation14_spill] sm:$0xff] }
 0xa76   :  { %6292 = vmatpush3.msra.mxu0 %v6729_v47  ;;  %6295 = vmatprep.mubr.msk.f32.mxu0 %vm60_vm0, %v6887_v24  ;;  %v7116_v47 = vld [vmem:[#allocation15_spill] sm:$0xff] }
 0xa77   :  { %6293 = vmatprep.subr.mxu0 %v6731_v11 }
 0xa78   :  { %6294 = vmatpush3.msra.mxu0 %v6731_v11  ;;  %v7117_v11 = vld [vmem:[#allocation16_spill] sm:$0xff] }
 0xa79   :  { %6296 = vmatmul.mubr.msk.f32.vlgmr.msra.gmra.mxu0 %vm60_vm0, %v6895_v0  ;;  %6305 = vmatprep.subr.mxu0 %v7114_v49 }
 0xa7a   :  { %6306 = vmatpush3.msra.mxu0 %v7114_v49  ;;  %6309 = vmatprep.mubr.msk.f32.mxu0 %vm60_vm0, %v6898_v2 }
 0xa7b   :  { %6307 = vmatprep.subr.mxu0 %v7115_v44 }
 0xa7c   :  { %6308 = vmatpush3.msra.mxu0 %v7115_v44 }
 0xa7d   :  { %6310 = vmatmul.mubr.msk.f32.vlgmr.msra.gmra.mxu0 %vm60_vm0, %v6907_v14  ;;  %6319 = vmatprep.subr.mxu0 %v7116_v47 }
 0xa7e   :  { %6320 = vmatpush3.msra.mxu0 %v7116_v47  ;;  %6323 = vmatprep.mubr.msk.f32.mxu0 %vm60_vm0, %v6845_v19  ;;  %v7119_v19 = vld [vmem:[#allocation17_spill] sm:$0xff] }
 0xa7f   :  { %6321 = vmatprep.subr.mxu0 %v7117_v11 }
 0xa80   :  { %6322 = vmatpush3.msra.mxu0 %v7117_v11 }
 0xa81   :  { %6324 = vmatmul.mubr.msk.f32.vlgmr.msra.gmra.mxu0 %vm60_vm0, %v6849_v21  ;;  %v7121_v21 = vld [vmem:[#allocation19_spill] sm:$0xff] }
 0xa82   :  { %6337 = vmatprep.mubr.msk.f32.mxu0 %vm60_vm0, %v7118_v20 }
 0xb35   :  { %v6283_v22 = vpop.f32.mrf.mxu0 }
 0xb37   :  { %v4413_v25 = vpop.f32.mrf.mxu0 }
 0xb39   :  { %v6297_v26 = vpop.f32.mrf.mxu0 }
 0xb3a   :  { %6298 = vmatprep.subr.mxu1 %v6297_v26 }
 0xb3b   :  { %v4579_v31 = vpop.f32.mrf.mxu0  ;;  %6299 = vmatpush3.msra.mxu1 %v6297_v26 }
 0xb3c   :  { %6300 = vmatprep.subr.mxu1 %v4579_v31 }
 0xb3d   :  { %6301 = vmatpush3.msra.mxu1 %v4579_v31  ;;  %v6311_v32 = vpop.f32.mrf.mxu0 }
 0xb3e   :  { %6303 = vmatmul.mubr.msk.f32.vlgmr.msra.gmra.mxu1 %vm60_vm0, %v7119_v19  ;;  %6312 = vmatprep.subr.mxu1 %v6311_v32 }
 0xb3f   :  { %v4749_v35 = vpop.f32.mrf.mxu0  ;;  %6313 = vmatpush3.msra.mxu1 %v6311_v32  ;;  %6316 = vmatprep.mubr.msk.f32.mxu1 %vm60_vm0, %v7120_v36 }
 0xb40   :  { %6314 = vmatprep.subr.mxu1 %v4749_v35 }
 0xb41   :  { %6315 = vmatpush3.msra.mxu1 %v4749_v35  ;;  %v6325_v3 = vpop.f32.mrf.mxu0 }
 0xb42   :  { %6317 = vmatmul.mubr.msk.f32.vlgmr.msra.gmra.mxu1 %vm60_vm0, %v7121_v21  ;;  %6326 = vmatprep.subr.mxu1 %v7122_v37 }
 0xb43   :  { %6327 = vmatpush3.msra.mxu1 %v7122_v37  ;;  %6330 = vmatprep.mubr.msk.f32.mxu1 %vm60_vm0, %v6865_v30  ;;  %v4922_v7 = vpop.f32.mrf.mxu0  ;;  %v6290_v30 = vpop.f32.mrf.mxu1 }
 0xb44   :  { %6328 = vmatprep.subr.mxu1 %v7123_v40  ;;  %v4500_v53 = vadd.f32 %v6290_v30, %v6283_v22 }
 0xb45   :  { %6329 = vmatpush3.msra.mxu1 %v7123_v40  ;;  %v4494_v27 = vpop.f32.mrf.mxu1 }
 0xb46   :  { %6331 = vmatmul.mubr.msk.f32.vlgmr.msra.gmra.mxu1 %vm60_vm0, %v6873_v33  ;;  %6340 = vmatprep.subr.mxu1 %v6325_v3  ;;  %v4495_v23 = vadd.f32 %v4494_v27, %v4413_v25 }
 0xb47   :  { %6344 = vmatprep.mubr.msk.f32.mxu1 %vm60_vm0, %v7124_v1  ;;  %6341 = vmatpush3.msra.mxu1 %v6325_v3 }
 0xb48   :  { %6342 = vmatprep.subr.mxu1 %v4922_v7 }
 0xb49   :  { %6343 = vmatpush3.msra.mxu1 %v4922_v7 }
 0xb4a   :  { %6345 = vmatmul.mubr.msk.f32.vlgmr.msra.gmra.mxu1 %vm60_vm0, %v7125_v41 }
 0xb4b   :  { %6358 = vmatprep.mubr.msk.f32.mxu1 %vm60_vm0, %v6841_v17 }
 0xbfe   :  { %v6304_v43 = vpop.f32.mrf.mxu1 }
 0xbff   :  { %v4672_v9 = vadd.f32 %v6304_v43, %v4500_v53 }
 0xc00   :  { %v4662_v33 = vpop.f32.mrf.mxu1 }
 0xc01   :  { %v4671_v57 = vadd.f32 %v4662_v33, %v4495_v23 }
 0xc02   :  { %v6318_v42 = vpop.f32.mrf.mxu1 }
 0xc03   :  { %v4842_v58 = vadd.f32 %v6318_v42, %v4672_v9 }
 0xc04   :  { %v4832_v59 = vpop.f32.mrf.mxu1 }
 0xc05   :  { %4845 = vst.msk [vmem:[#allocation8 + $0x68] sm:$0xff] %vm60_vm0, %v4842_v58  ;;  %v4841_v60 = vadd.f32 %v4832_v59, %v4671_v57 }
 0xc06   :  { %v6332_v61 = vpop.f32.mrf.mxu1 }
 0xc07   :  { %4844 = vst.msk [vmem:[#allocation8 + $0x60] sm:$0xff] %vm60_vm0, %v4841_v60  ;;  %6333 = vmatprep.subr.mxu0 %v6332_v61 }
 0xc08   :  { %v5009_v62 = vpop.f32.mrf.mxu1  ;;  %6334 = vmatpush3.msra.mxu0 %v6332_v61 }
 0xc09   :  { %6335 = vmatprep.subr.mxu0 %v5009_v62 }
 0xc0a   :  { %6336 = vmatpush3.msra.mxu0 %v5009_v62 }
 0xc0b   :  { %6338 = vmatmul.mubr.msk.f32.vlgmr.msra.gmra.mxu0 %vm60_vm0, %v6809_v5  ;;  %6347 = vmatprep.subr.mxu0 %v6811_v12 }
 0xc0c   :  { %6348 = vmatpush3.msra.mxu0 %v6811_v12  ;;  %6351 = vmatprep.mubr.msk.f32.mxu0 %vm60_vm0, %v6887_v24 }
 0xc0d   :  { %6349 = vmatprep.subr.mxu0 %v6813_v4 }
 0xc0e   :  { %6350 = vmatpush3.msra.mxu0 %v6813_v4 }
 0xc0f   :  { %6352 = vmatmul.mubr.msk.f32.vlgmr.msra.gmra.mxu0 %vm60_vm0, %v6895_v0  ;;  %6361 = vmatprep.subr.mxu0 %v6821_v50 }
 0xc10   :  { %6362 = vmatpush3.msra.mxu0 %v6821_v50  ;;  %6365 = vmatprep.mubr.msk.f32.mxu0 %vm60_vm0, %v6898_v2 }
 0xc11   :  { %6363 = vmatprep.subr.mxu0 %v6825_v48 }
 0xc12   :  { %6364 = vmatpush3.msra.mxu0 %v6825_v48  ;;  %v6346_v48 = vpop.f32.mrf.mxu1 }
 0xc13   :  { %6366 = vmatmul.mubr.msk.f32.vlgmr.msra.gmra.mxu0 %vm60_vm0, %v6907_v14 }
 0xc14   :  { %v5173_v0 = vpop.f32.mrf.mxu1 }
 0xccb   :  { %v6339_v12 = vpop.f32.mrf.mxu0 }
 0xccc   :  { %v5179_v14 = vadd.f32 %v6346_v48, %v6339_v12 }
 0xccd   :  { %v5092_v5 = vpop.f32.mrf.mxu0 }
 0xcce   :  { %v5174_v10 = vadd.f32 %v5173_v0, %v5092_v5 }
 0xccf   :  { %v6353_v4 = vpop.f32.mrf.mxu0 }
 0xcd0   :  { %6354 = vmatprep.subr.mxu1 %v6353_v4 }
 0xcd1   :  { %v5258_v17 = vpop.f32.mrf.mxu0  ;;  %6355 = vmatpush3.msra.mxu1 %v6353_v4 }
 0xcd2   :  { %6356 = vmatprep.subr.mxu1 %v5258_v17 }
 0xcd3   :  { %6357 = vmatpush3.msra.mxu1 %v5258_v17  ;;  %v6367_v24 = vpop.f32.mrf.mxu0 }
 0xcd4   :  { %6359 = vmatmul.mubr.msk.f32.vlgmr.msra.gmra.mxu1 %vm60_vm0, %v6855_v52  ;;  %6368 = vmatprep.subr.mxu1 %v6367_v24 }
 0xcd5   :  { %v5428_v50 = vpop.f32.mrf.mxu0  ;;  %6369 = vmatpush3.msra.mxu1 %v6367_v24  ;;  %6372 = vmatprep.mubr.msk.f32.mxu1 %vm60_vm0, %v6857_v55 }
 0xcd6   :  { %6370 = vmatprep.subr.mxu1 %v5428_v50 }
 0xcd7   :  { %6371 = vmatpush3.msra.mxu1 %v5428_v50 }
 0xcd8   :  { %6373 = vmatmul.mubr.msk.f32.vlgmr.msra.gmra.mxu1 %vm60_vm0, %v6863_v8 }
 0xd94   :  { %v6360_v2 = vpop.f32.mrf.mxu1 }
 0xd95   :  { %v5351_v28 = vadd.f32 %v6360_v2, %v5179_v14 }
 0xd96   :  { %v5341_v63 = vpop.f32.mrf.mxu1 }
 0xd97   :  { %v5350_v52 = vadd.f32 %v5341_v63, %v5174_v10 }
 0xd98   :  { %v6374_v29 = vpop.f32.mrf.mxu1 }
 0xd99   :  { %v5521_v34 = vadd.f32 %v6374_v29, %v5351_v28 }
 0xd9a   :  { %v5511_v38 = vpop.f32.mrf.mxu1 }
 0xd9b   :  { %5524 = vst.msk [vmem:[#allocation8 + $0x78] sm:$0xff] %vm60_vm0, %v5521_v34  ;;  %v5520_v55 = vadd.f32 %v5511_v38, %v5350_v52 }
 0xd9d   :  { %5523 = vst.msk [vmem:[#allocation8 + $0x70] sm:$0xff] %vm60_vm0, %v5520_v55 }
 0xd9e   :  { %6452 = shalt.err (!%p6449_p5)
}
 0xd9f   :  { %5536 = dma.vmem_to_hbm [thread:$0]  %s5531_s2, 2048, %s7080_s3, [#allocation4], %s6469_s17, %s6469_s17, %s6470_s18  }
 0xda0   :  { %6465 = dma.done.wait [#allocation4], 2048  }
 0xda1   :  { %6466 = vsyncadd [#allocation4], 4294965248 }
 0xda2   :  { %5540 = vsyncpa [#allocation3], 1 }
 0xda3   :  { %5541 = vsyncpa [#allocation6], 1 }
 0xda4   :  { %5542 = vsyncpa [#allocation4], 1 }

</bundles_post_ra>
